<compile_context>
chip_gen: v7x
topology: tpu7x:2x2x1
jax: 0.10.0
libtpu: 0.0.40
codegen_flags: <defaults>
</compile_context>

<pallas_src>
import math

import jax
import jax.numpy as jnp
from jax.experimental import pallas as pl
from jax.experimental.pallas import tpu as pltpu

# ---------------- synthetic BERT config (small, consistent with the module's forward) ----
VOCAB = 100
TYPE_VOCAB = 2
MAX_POS = 64
HIDDEN = 32
HEADS = 2
HEAD_DIM = HIDDEN // HEADS
INTER = 64
LAYERS = 2
NCLASSES = 3
SEQ = 8
BATCH = 2
LN_EPS = 1e-12


# ---------------- fused forward kernel ----------------------------------------------------
def _fused_bert_kernel(emb_ref, mask_ref, clssel_ref, embg_ref, embb_ref,
                       wqkv_ref, bqkv_ref, wo_ref, bo_ref, ln1g_ref, ln1b_ref,
                       wi_ref, bi_ref, wf_ref, bf_ref, ln2g_ref, ln2b_ref,
                       wpool_ref, bpool_ref, wcls_ref, bcls_ref,
                       probs_ref, h_ref):
    l = pl.program_id(0)

    def layernorm(x, g, b):
        mean = jnp.mean(x, axis=-1, keepdims=True)
        var = jnp.mean((x - mean) ** 2, axis=-1, keepdims=True)
        return (x - mean) * jax.lax.rsqrt(var + LN_EPS) * g + b

    # --- first grid step: embedding LayerNorm (no residual) into the VMEM activation carry ---
    @pl.when(l == 0)
    def _():
        h_ref[...] = layernorm(emb_ref[...], embg_ref[...], embb_ref[...])

    h = h_ref[...]                                    # (B*S, H) resident activation
    mask = mask_ref[...]                              # (B*S, B*S) additive block-diag mask

    # --- fused QKV projection: one (B*S, H) @ (H, 3H) MXU push ---
    qkv = jnp.dot(h, wqkv_ref[0], preferred_element_type=jnp.float32) + bqkv_ref[0]

    wo = wo_ref[0]                                    # (H, H)
    scale = 1.0 / math.sqrt(HEAD_DIM)
    attn_out = jnp.zeros((BATCH * SEQ, HIDDEN), jnp.float32)
    for hh in range(HEADS):                           # static unroll, everything stays in vregs
        q_h = qkv[:, hh * HEAD_DIM:(hh + 1) * HEAD_DIM]
        k_h = qkv[:, HIDDEN + hh * HEAD_DIM:HIDDEN + (hh + 1) * HEAD_DIM]
        v_h = qkv[:, 2 * HIDDEN + hh * HEAD_DIM:2 * HIDDEN + (hh + 1) * HEAD_DIM]
        s = jax.lax.dot_general(q_h, k_h, (((1,), (1,)), ((), ())),
                                preferred_element_type=jnp.float32) * scale + mask
        s = s - jnp.max(s, axis=-1, keepdims=True)
        p = jnp.exp(s)
        p = p / jnp.sum(p, axis=-1, keepdims=True)
        ctx_h = jnp.dot(p, v_h, preferred_element_type=jnp.float32)          # (B*S, Dh)
        # fold the output projection into the head loop: ctx @ Wo == sum_h ctx_h @ Wo[h-rows]
        attn_out = attn_out + jnp.dot(ctx_h, wo[hh * HEAD_DIM:(hh + 1) * HEAD_DIM, :],
                                      preferred_element_type=jnp.float32)
    attn_out = attn_out + bo_ref[0]

    h1 = layernorm(attn_out + h, ln1g_ref[0], ln1b_ref[0])

    inter = jnp.dot(h1, wi_ref[0], preferred_element_type=jnp.float32) + bi_ref[0]
    # TODO(synk): HF BERT uses exact erf-GELU; tanh approximation kept for robust Mosaic lowering.
    inter = jax.nn.gelu(inter, approximate=True)
    ffn = jnp.dot(inter, wf_ref[0], preferred_element_type=jnp.float32) + bf_ref[0]
    h2 = layernorm(ffn + h1, ln2g_ref[0], ln2b_ref[0])
    h_ref[...] = h2                                   # carry to next layer

    # --- last grid step: CLS pooling + pooler tanh + classifier + softmax, fused -------------
    @pl.when(l == LAYERS - 1)
    def _():
        # CLS-row extraction as a tiny MXU matmul with a constant selector (no strided gather).
        cls = jnp.dot(clssel_ref[...], h2, preferred_element_type=jnp.float32)        # (B, H)
        pooled = jnp.tanh(jnp.dot(cls, wpool_ref[...], preferred_element_type=jnp.float32)
                          + bpool_ref[...])
        logits = jnp.dot(pooled, wcls_ref[...], preferred_element_type=jnp.float32) + bcls_ref[...]
        logits = logits - jnp.max(logits, axis=-1, keepdims=True)
        e = jnp.exp(logits)
        probs_ref[...] = e / jnp.sum(e, axis=-1, keepdims=True)


# ---------------- wrapper ------------------------------------------------------------------
def nli_infer_bert_forward(params, input_ids, input_mask, segment_ids):
    """Equivalent of: logits = BertForSequenceClassification(input_ids, segment_ids, input_mask);
       probs = softmax(logits, dim=-1). Dropout is identity (eval mode)."""
    B, S = input_ids.shape
    BS = B * S

    # --- embeddings: gathers are XLA glue; the embedding LayerNorm runs inside the kernel ---
    word = jnp.take(params["word_emb"], input_ids, axis=0)              # (B,S,H)
    pos = params["pos_emb"][:S][None, :, :]                             # (1,S,H)
    tok = jnp.take(params["type_emb"], segment_ids, axis=0)             # (B,S,H)
    emb = (word + pos + tok).reshape(BS, HIDDEN).astype(jnp.float32)

    # --- block-diagonal additive attention mask over flattened (B*S) keys ---
    # 0 for (same-example, non-padded key); -10000 otherwise (padding, exactly as BERT's
    # extended mask) — cross-example entries underflow to exactly 0 after softmax in f32.
    batch_of = jnp.arange(BS, dtype=jnp.int32) // S
    same = batch_of[:, None] == batch_of[None, :]
    key_ok = input_mask.reshape(BS) > 0
    mask_full = jnp.where(same & key_ok[None, :], 0.0, -10000.0).astype(jnp.float32)

    # --- constant selector picking the CLS row of each example (pooling as a matmul) ---
    cls_sel = jnp.zeros((B, BS), jnp.float32).at[jnp.arange(B), jnp.arange(B) * S].set(1.0)

    grid_spec = pltpu.PrefetchScalarGridSpec(
        num_scalar_prefetch=0,
        grid=(LAYERS,),
        in_specs=[
            pl.BlockSpec((BS, HIDDEN), lambda l: (0, 0)),                  # emb
            pl.BlockSpec((BS, BS), lambda l: (0, 0)),                      # mask
            pl.BlockSpec((B, BS), lambda l: (0, 0)),                       # cls selector
            pl.BlockSpec((1, HIDDEN), lambda l: (0, 0)),                   # emb LN gamma
            pl.BlockSpec((1, HIDDEN), lambda l: (0, 0)),                   # emb LN beta
            pl.BlockSpec((1, HIDDEN, 3 * HIDDEN), lambda l: (l, 0, 0)),    # wqkv (stacked)
            pl.BlockSpec((1, 1, 3 * HIDDEN), lambda l: (l, 0, 0)),         # bqkv
            pl.BlockSpec((1, HIDDEN, HIDDEN), lambda l: (l, 0, 0)),        # wo
            pl.BlockSpec((1, 1, HIDDEN), lambda l: (l, 0, 0)),             # bo
            pl.BlockSpec((1, 1, HIDDEN), lambda l: (l, 0, 0)),             # ln1 gamma
            pl.BlockSpec((1, 1, HIDDEN), lambda l: (l, 0, 0)),             # ln1 beta
            pl.BlockSpec((1, HIDDEN, INTER), lambda l: (l, 0, 0)),         # wi
            pl.BlockSpec((1, 1, INTER), lambda l: (l, 0, 0)),              # bi
            pl.BlockSpec((1, INTER, HIDDEN), lambda l: (l, 0, 0)),         # wf
            pl.BlockSpec((1, 1, HIDDEN), lambda l: (l, 0, 0)),             # bf
            pl.BlockSpec((1, 1, HIDDEN), lambda l: (l, 0, 0)),             # ln2 gamma
            pl.BlockSpec((1, 1, HIDDEN), lambda l: (l, 0, 0)),             # ln2 beta
            pl.BlockSpec((HIDDEN, HIDDEN), lambda l: (0, 0)),              # pooler W
            pl.BlockSpec((1, HIDDEN), lambda l: (0, 0)),                   # pooler b
            pl.BlockSpec((HIDDEN, NCLASSES), lambda l: (0, 0)),            # classifier W
            pl.BlockSpec((1, NCLASSES), lambda l: (0, 0)),                 # classifier b
        ],
        out_specs=pl.BlockSpec((B, NCLASSES), lambda l: (0, 0)),
        scratch_shapes=[pltpu.VMEM((BS, HIDDEN), jnp.float32)],            # activation carry
    )

    probs = pl.pallas_call(
        _fused_bert_kernel,
        out_shape=jax.ShapeDtypeStruct((B, NCLASSES), jnp.float32),
        grid_spec=grid_spec,
        # layer axis is a sequential carry -> "arbitrary"; when scaling to real BERT, add a
        # row-tiled B*S grid axis marked "parallel" and set vmem_limit_bytes for v7x's 64 MiB.
        compiler_params=pltpu.CompilerParams(dimension_semantics=("arbitrary",)),
    )(emb, mask_full, cls_sel, params["emb_ln_g"], params["emb_ln_b"],
      params["wqkv"], params["bqkv"], params["wo"], params["bo"],
      params["ln1_g"], params["ln1_b"], params["wi"], params["bi"],
      params["wf"], params["bf"], params["ln2_g"], params["ln2_b"],
      params["w_pool"], params["b_pool"], params["w_cls"], params["b_cls"])
    return probs


# ---------------- parameter init (deterministic, synthetic; stacked per-layer weights) -----
def init_params(key):
    keys = iter(jax.random.split(key, 16))

    def nrm(shape):
        return 0.02 * jax.random.normal(next(keys), shape, jnp.float32)

    return {
        "word_emb": nrm((VOCAB, HIDDEN)),
        "pos_emb": nrm((MAX_POS, HIDDEN)),
        "type_emb": nrm((TYPE_VOCAB, HIDDEN)),
        "emb_ln_g": jnp.ones((1, HIDDEN), jnp.float32),
        "emb_ln_b": jnp.zeros((1, HIDDEN), jnp.float32),
        # per-layer weights stacked on a leading LAYERS axis; q|k|v fused into one (H, 3H) matmul
        "wqkv": nrm((LAYERS, HIDDEN, 3 * HIDDEN)),
        "bqkv": jnp.zeros((LAYERS, 1, 3 * HIDDEN), jnp.float32),
        "wo": nrm((LAYERS, HIDDEN, HIDDEN)),
        "bo": jnp.zeros((LAYERS, 1, HIDDEN), jnp.float32),
        "ln1_g": jnp.ones((LAYERS, 1, HIDDEN), jnp.float32),
        "ln1_b": jnp.zeros((LAYERS, 1, HIDDEN), jnp.float32),
        "wi": nrm((LAYERS, HIDDEN, INTER)),
        "bi": jnp.zeros((LAYERS, 1, INTER), jnp.float32),
        "wf": nrm((LAYERS, INTER, HIDDEN)),
        "bf": jnp.zeros((LAYERS, 1, HIDDEN), jnp.float32),
        "ln2_g": jnp.ones((LAYERS, 1, HIDDEN), jnp.float32),
        "ln2_b": jnp.zeros((LAYERS, 1, HIDDEN), jnp.float32),
        "w_pool": nrm((HIDDEN, HIDDEN)),
        "b_pool": jnp.zeros((1, HIDDEN), jnp.float32),
        "w_cls": nrm((HIDDEN, NCLASSES)),
        "b_cls": jnp.zeros((1, NCLASSES), jnp.float32),
    }


# ---------------- main ---------------------------------------------------------------------
if __name__ == "__main__":
    key = jax.random.PRNGKey(0)
    pkey, ikey = jax.random.split(key)
    params = init_params(pkey)

    input_ids = jax.random.randint(ikey, (BATCH, SEQ), 1, VOCAB, dtype=jnp.int32)
    # second example has 2 padding tokens at the end
    input_mask = jnp.array([[1] * SEQ,
                            [1] * (SEQ - 2) + [0] * 2], dtype=jnp.int32)
    segment_ids = jnp.zeros((BATCH, SEQ), dtype=jnp.int32)
    input_ids = input_ids * input_mask  # pad token id 0

    fwd = jax.jit(nli_infer_bert_forward)
    probs = jax.block_until_ready(fwd(params, input_ids, input_mask, segment_ids))

    assert probs.shape == (BATCH, NCLASSES)
    assert jnp.allclose(jnp.sum(probs, axis=-1), 1.0, atol=1e-5)
    print("KERNEL_OK")
</pallas_src>

<mosaic_0001>
module attributes {stable_mosaic.version = 11 : i64} {
  func.func @_fused_bert_kernel(%arg0: i32, %arg1: memref<16x32xf32, #tpu.memory_space<vmem>>, %arg2: memref<16x16xf32, #tpu.memory_space<vmem>>, %arg3: memref<2x16xf32, #tpu.memory_space<vmem>>, %arg4: memref<1x32xf32, #tpu.memory_space<vmem>>, %arg5: memref<1x32xf32, #tpu.memory_space<vmem>>, %arg6: memref<1x32x96xf32, #tpu.memory_space<vmem>>, %arg7: memref<1x1x96xf32, #tpu.memory_space<vmem>>, %arg8: memref<1x32x32xf32, #tpu.memory_space<vmem>>, %arg9: memref<1x1x32xf32, #tpu.memory_space<vmem>>, %arg10: memref<1x1x32xf32, #tpu.memory_space<vmem>>, %arg11: memref<1x1x32xf32, #tpu.memory_space<vmem>>, %arg12: memref<1x32x64xf32, #tpu.memory_space<vmem>>, %arg13: memref<1x1x64xf32, #tpu.memory_space<vmem>>, %arg14: memref<1x64x32xf32, #tpu.memory_space<vmem>>, %arg15: memref<1x1x32xf32, #tpu.memory_space<vmem>>, %arg16: memref<1x1x32xf32, #tpu.memory_space<vmem>>, %arg17: memref<1x1x32xf32, #tpu.memory_space<vmem>>, %arg18: memref<32x32xf32, #tpu.memory_space<vmem>>, %arg19: memref<1x32xf32, #tpu.memory_space<vmem>>, %arg20: memref<32x3xf32, #tpu.memory_space<vmem>>, %arg21: memref<1x3xf32, #tpu.memory_space<vmem>>, %arg22: memref<2x3xf32, #tpu.memory_space<vmem>>, %arg23: memref<16x32xf32, #tpu.memory_space<vmem>>) attributes {dimension_semantics = [#tpu.dimension_semantics<arbitrary>], iteration_bounds = array<i64: 2>, scalar_prefetch = 0 : i64, scratch_operands = 1 : i64, tpu.core_type = #tpu.core_type<tc>, window_params = [{pipeline_mode = #tpu.pipeline_mode<synchronous>, transform_indices = @transform_0, window_bounds = array<i64: 16, 32>}, {pipeline_mode = #tpu.pipeline_mode<synchronous>, transform_indices = @transform_1, window_bounds = array<i64: 16, 16>}, {pipeline_mode = #tpu.pipeline_mode<synchronous>, transform_indices = @transform_2, window_bounds = array<i64: 2, 16>}, {pipeline_mode = #tpu.pipeline_mode<synchronous>, transform_indices = @transform_3, window_bounds = array<i64: 1, 32>}, {pipeline_mode = #tpu.pipeline_mode<synchronous>, transform_indices = @transform_4, window_bounds = array<i64: 1, 32>}, {transform_indices = @transform_5, window_bounds = array<i64: 1, 32, 96>}, {transform_indices = @transform_6, window_bounds = array<i64: 1, 1, 96>}, {transform_indices = @transform_7, window_bounds = array<i64: 1, 32, 32>}, {transform_indices = @transform_8, window_bounds = array<i64: 1, 1, 32>}, {transform_indices = @transform_9, window_bounds = array<i64: 1, 1, 32>}, {transform_indices = @transform_10, window_bounds = array<i64: 1, 1, 32>}, {transform_indices = @transform_11, window_bounds = array<i64: 1, 32, 64>}, {transform_indices = @transform_12, window_bounds = array<i64: 1, 1, 64>}, {transform_indices = @transform_13, window_bounds = array<i64: 1, 64, 32>}, {transform_indices = @transform_14, window_bounds = array<i64: 1, 1, 32>}, {transform_indices = @transform_15, window_bounds = array<i64: 1, 1, 32>}, {transform_indices = @transform_16, window_bounds = array<i64: 1, 1, 32>}, {pipeline_mode = #tpu.pipeline_mode<synchronous>, transform_indices = @transform_17, window_bounds = array<i64: 32, 32>}, {pipeline_mode = #tpu.pipeline_mode<synchronous>, transform_indices = @transform_18, window_bounds = array<i64: 1, 32>}, {pipeline_mode = #tpu.pipeline_mode<synchronous>, transform_indices = @transform_19, window_bounds = array<i64: 32, 3>}, {pipeline_mode = #tpu.pipeline_mode<synchronous>, transform_indices = @transform_20, window_bounds = array<i64: 1, 3>}, {pipeline_mode = #tpu.pipeline_mode<synchronous>, transform_indices = @transform_21, window_bounds = array<i64: 2, 3>}]} {
    %c0_i32 = arith.constant 0 : i32
    %0 = arith.cmpi eq, %arg0, %c0_i32 : i32
    %1 = arith.extui %0 : i1 to i32
    %c0_i32_0 = arith.constant 0 : i32
    %2 = arith.cmpi ne, %1, %c0_i32_0 : i32
    scf.if %2 {
      %c0_72 = arith.constant 0 : index
      %c0_73 = arith.constant 0 : index
      %144 = vector.load %arg1[%c0_72, %c0_73] : memref<16x32xf32, #tpu.memory_space<vmem>>, vector<16x32xf32>
      %c0_74 = arith.constant 0 : index
      %c0_75 = arith.constant 0 : index
      %145 = vector.load %arg4[%c0_74, %c0_75] : memref<1x32xf32, #tpu.memory_space<vmem>>, vector<1x32xf32>
      %c0_76 = arith.constant 0 : index
      %c0_77 = arith.constant 0 : index
      %146 = vector.load %arg5[%c0_76, %c0_77] : memref<1x32xf32, #tpu.memory_space<vmem>>, vector<1x32xf32>
      %cst_78 = arith.constant dense<0.000000e+00> : vector<16xf32>
      %147 = vector.multi_reduction <add>, %144, %cst_78 [1] : vector<16x32xf32> to vector<16xf32>
      %148 = vector.shape_cast %147 : vector<16xf32> to vector<16x1xf32>
      %cst_79 = arith.constant 3.200000e+01 : f32
      %149 = vector.broadcast %cst_79 : f32 to vector<16x1xf32>
      %150 = arith.divf %148, %149 : vector<16x1xf32>
      %151 = vector.broadcast %150 : vector<16x1xf32> to vector<16x32xf32>
      %152 = arith.subf %144, %151 : vector<16x32xf32>
      %153 = arith.mulf %152, %152 : vector<16x32xf32>
      %cst_80 = arith.constant dense<0.000000e+00> : vector<16xf32>
      %154 = vector.multi_reduction <add>, %153, %cst_80 [1] : vector<16x32xf32> to vector<16xf32>
      %155 = vector.shape_cast %154 : vector<16xf32> to vector<16x1xf32>
      %cst_81 = arith.constant 3.200000e+01 : f32
      %156 = vector.broadcast %cst_81 : f32 to vector<16x1xf32>
      %157 = arith.divf %155, %156 : vector<16x1xf32>
      %158 = vector.broadcast %150 : vector<16x1xf32> to vector<16x32xf32>
      %159 = arith.subf %144, %158 : vector<16x32xf32>
      %cst_82 = arith.constant 9.99999996E-13 : f32
      %160 = vector.broadcast %cst_82 : f32 to vector<16x1xf32>
      %161 = arith.addf %157, %160 : vector<16x1xf32>
      %162 = math.rsqrt %161 : vector<16x1xf32>
      %163 = vector.broadcast %162 : vector<16x1xf32> to vector<16x32xf32>
      %164 = arith.mulf %159, %163 : vector<16x32xf32>
      %165 = vector.broadcast %145 : vector<1x32xf32> to vector<16x32xf32>
      %166 = arith.mulf %164, %165 : vector<16x32xf32>
      %167 = vector.broadcast %146 : vector<1x32xf32> to vector<16x32xf32>
      %168 = arith.addf %166, %167 : vector<16x32xf32>
      %c0_83 = arith.constant 0 : index
      %c0_84 = arith.constant 0 : index
      %169 = vector.load %arg23[%c0_83, %c0_84] : memref<16x32xf32, #tpu.memory_space<vmem>>, vector<16x32xf32>
      tpu.vector_store %arg23[%c0_83, %c0_84], %168 {strides = array<i32>} : memref<16x32xf32, #tpu.memory_space<vmem>>, vector<16x32xf32>,
    } else {
    }
    %c0 = arith.constant 0 : index
    %c0_1 = arith.constant 0 : index
    %3 = vector.load %arg23[%c0, %c0_1] : memref<16x32xf32, #tpu.memory_space<vmem>>, vector<16x32xf32>
    %c0_2 = arith.constant 0 : index
    %c0_3 = arith.constant 0 : index
    %4 = vector.load %arg2[%c0_2, %c0_3] : memref<16x16xf32, #tpu.memory_space<vmem>>, vector<16x16xf32>
    %c0_4 = arith.constant 0 : index
    %c0_5 = arith.constant 0 : index
    %c0_6 = arith.constant 0 : index
    %5 = vector.load %arg6[%c0_4, %c0_5, %c0_6] : memref<1x32x96xf32, #tpu.memory_space<vmem>>, vector<1x32x96xf32>
    %6 = vector.shape_cast %5 : vector<1x32x96xf32> to vector<32x96xf32>
    %cst = arith.constant dense<0.000000e+00> : vector<16x96xf32>
    %7 = tpu.matmul %3, %6, %cst {dimension_numbers = #tpu.dot_dimension_numbers<[1], [0], [0], [1], [0, 0, 1, 1], [], []>} : vector<16x32xf32>, vector<32x96xf32>, vector<16x96xf32> -> vector<16x96xf32>
    %c0_7 = arith.constant 0 : index
    %c0_8 = arith.constant 0 : index
    %c0_9 = arith.constant 0 : index
    %8 = vector.load %arg7[%c0_7, %c0_8, %c0_9] : memref<1x1x96xf32, #tpu.memory_space<vmem>>, vector<1x1x96xf32>
    %9 = vector.shape_cast %8 : vector<1x1x96xf32> to vector<1x96xf32>
    %10 = vector.broadcast %9 : vector<1x96xf32> to vector<16x96xf32>
    %11 = arith.addf %7, %10 : vector<16x96xf32>
    %c0_10 = arith.constant 0 : index
    %c0_11 = arith.constant 0 : index
    %c0_12 = arith.constant 0 : index
    %12 = vector.load %arg8[%c0_10, %c0_11, %c0_12] : memref<1x32x32xf32, #tpu.memory_space<vmem>>, vector<1x32x32xf32>
    %13 = vector.shape_cast %12 : vector<1x32x32xf32> to vector<32x32xf32>
    %cst_13 = arith.constant 0.000000e+00 : f32
    %14 = vector.broadcast %cst_13 : f32 to vector<16x32xf32>
    %15 = vector.extract_strided_slice %11 {offsets = [0, 0], sizes = [16, 16], strides = [1, 1]} : vector<16x96xf32> to vector<16x16xf32>
    %16 = vector.extract_strided_slice %11 {offsets = [0, 32], sizes = [16, 16], strides = [1, 1]} : vector<16x96xf32> to vector<16x16xf32>
    %17 = vector.extract_strided_slice %11 {offsets = [0, 64], sizes = [16, 16], strides = [1, 1]} : vector<16x96xf32> to vector<16x16xf32>
    %cst_14 = arith.constant dense<0.000000e+00> : vector<16x16xf32>
    %18 = tpu.matmul %15, %16, %cst_14 {dimension_numbers = #tpu.dot_dimension_numbers<[1], [1], [0], [0], [0, 0, 1, 0], [], []>} : vector<16x16xf32>, vector<16x16xf32>, vector<16x16xf32> -> vector<16x16xf32>
    %cst_15 = arith.constant 2.500000e-01 : f32
    %19 = vector.broadcast %cst_15 : f32 to vector<16x16xf32>
    %20 = arith.mulf %18, %19 : vector<16x16xf32>
    %21 = arith.addf %20, %4 : vector<16x16xf32>
    %cst_16 = arith.constant dense<0xFF800000> : vector<16xf32>
    %22 = vector.multi_reduction <maximumf>, %21, %cst_16 [1] : vector<16x16xf32> to vector<16xf32>
    %23 = vector.shape_cast %22 : vector<16xf32> to vector<16x1xf32>
    %24 = vector.broadcast %23 : vector<16x1xf32> to vector<16x16xf32>
    %25 = arith.subf %21, %24 : vector<16x16xf32>
    %26 = math.exp %25 : vector<16x16xf32>
    %cst_17 = arith.constant dense<0.000000e+00> : vector<16xf32>
    %27 = vector.multi_reduction <add>, %26, %cst_17 [1] : vector<16x16xf32> to vector<16xf32>
    %28 = vector.shape_cast %27 : vector<16xf32> to vector<16x1xf32>
    %29 = vector.broadcast %28 : vector<16x1xf32> to vector<16x16xf32>
    %30 = arith.divf %26, %29 : vector<16x16xf32>
    %cst_18 = arith.constant dense<0.000000e+00> : vector<16x16xf32>
    %31 = tpu.matmul %30, %17, %cst_18 {dimension_numbers = #tpu.dot_dimension_numbers<[1], [0], [0], [1], [0, 0, 1, 1], [], []>} : vector<16x16xf32>, vector<16x16xf32>, vector<16x16xf32> -> vector<16x16xf32>
    %32 = vector.extract_strided_slice %13 {offsets = [0, 0], sizes = [16, 32], strides = [1, 1]} : vector<32x32xf32> to vector<16x32xf32>
    %cst_19 = arith.constant dense<0.000000e+00> : vector<16x32xf32>
    %33 = tpu.matmul %31, %32, %cst_19 {dimension_numbers = #tpu.dot_dimension_numbers<[1], [0], [0], [1], [0, 0, 1, 1], [], []>} : vector<16x16xf32>, vector<16x32xf32>, vector<16x32xf32> -> vector<16x32xf32>
    %34 = arith.addf %14, %33 : vector<16x32xf32>
    %35 = vector.extract_strided_slice %11 {offsets = [0, 16], sizes = [16, 16], strides = [1, 1]} : vector<16x96xf32> to vector<16x16xf32>
    %36 = vector.extract_strided_slice %11 {offsets = [0, 48], sizes = [16, 16], strides = [1, 1]} : vector<16x96xf32> to vector<16x16xf32>
    %37 = vector.extract_strided_slice %11 {offsets = [0, 80], sizes = [16, 16], strides = [1, 1]} : vector<16x96xf32> to vector<16x16xf32>
    %cst_20 = arith.constant dense<0.000000e+00> : vector<16x16xf32>
    %38 = tpu.matmul %35, %36, %cst_20 {dimension_numbers = #tpu.dot_dimension_numbers<[1], [1], [0], [0], [0, 0, 1, 0], [], []>} : vector<16x16xf32>, vector<16x16xf32>, vector<16x16xf32> -> vector<16x16xf32>
    %cst_21 = arith.constant 2.500000e-01 : f32
    %39 = vector.broadcast %cst_21 : f32 to vector<16x16xf32>
    %40 = arith.mulf %38, %39 : vector<16x16xf32>
    %41 = arith.addf %40, %4 : vector<16x16xf32>
    %cst_22 = arith.constant dense<0xFF800000> : vector<16xf32>
    %42 = vector.multi_reduction <maximumf>, %41, %cst_22 [1] : vector<16x16xf32> to vector<16xf32>
    %43 = vector.shape_cast %42 : vector<16xf32> to vector<16x1xf32>
    %44 = vector.broadcast %43 : vector<16x1xf32> to vector<16x16xf32>
    %45 = arith.subf %41, %44 : vector<16x16xf32>
    %46 = math.exp %45 : vector<16x16xf32>
    %cst_23 = arith.constant dense<0.000000e+00> : vector<16xf32>
    %47 = vector.multi_reduction <add>, %46, %cst_23 [1] : vector<16x16xf32> to vector<16xf32>
    %48 = vector.shape_cast %47 : vector<16xf32> to vector<16x1xf32>
    %49 = vector.broadcast %48 : vector<16x1xf32> to vector<16x16xf32>
    %50 = arith.divf %46, %49 : vector<16x16xf32>
    %cst_24 = arith.constant dense<0.000000e+00> : vector<16x16xf32>
    %51 = tpu.matmul %50, %37, %cst_24 {dimension_numbers = #tpu.dot_dimension_numbers<[1], [0], [0], [1], [0, 0, 1, 1], [], []>} : vector<16x16xf32>, vector<16x16xf32>, vector<16x16xf32> -> vector<16x16xf32>
    %52 = vector.extract_strided_slice %13 {offsets = [16, 0], sizes = [16, 32], strides = [1, 1]} : vector<32x32xf32> to vector<16x32xf32>
    %cst_25 = arith.constant dense<0.000000e+00> : vector<16x32xf32>
    %53 = tpu.matmul %51, %52, %cst_25 {dimension_numbers = #tpu.dot_dimension_numbers<[1], [0], [0], [1], [0, 0, 1, 1], [], []>} : vector<16x16xf32>, vector<16x32xf32>, vector<16x32xf32> -> vector<16x32xf32>
    %54 = arith.addf %34, %53 : vector<16x32xf32>
    %c0_26 = arith.constant 0 : index
    %c0_27 = arith.constant 0 : index
    %c0_28 = arith.constant 0 : index
    %55 = vector.load %arg9[%c0_26, %c0_27, %c0_28] : memref<1x1x32xf32, #tpu.memory_space<vmem>>, vector<1x1x32xf32>
    %56 = vector.shape_cast %55 : vector<1x1x32xf32> to vector<1x32xf32>
    %57 = vector.broadcast %56 : vector<1x32xf32> to vector<16x32xf32>
    %58 = arith.addf %54, %57 : vector<16x32xf32>
    %59 = arith.addf %58, %3 : vector<16x32xf32>
    %c0_29 = arith.constant 0 : index
    %c0_30 = arith.constant 0 : index
    %c0_31 = arith.constant 0 : index
    %60 = vector.load %arg10[%c0_29, %c0_30, %c0_31] : memref<1x1x32xf32, #tpu.memory_space<vmem>>, vector<1x1x32xf32>
    %61 = vector.shape_cast %60 : vector<1x1x32xf32> to vector<1x32xf32>
    %c0_32 = arith.constant 0 : index
    %c0_33 = arith.constant 0 : index
    %c0_34 = arith.constant 0 : index
    %62 = vector.load %arg11[%c0_32, %c0_33, %c0_34] : memref<1x1x32xf32, #tpu.memory_space<vmem>>, vector<1x1x32xf32>
    %63 = vector.shape_cast %62 : vector<1x1x32xf32> to vector<1x32xf32>
    %cst_35 = arith.constant dense<0.000000e+00> : vector<16xf32>
    %64 = vector.multi_reduction <add>, %59, %cst_35 [1] : vector<16x32xf32> to vector<16xf32>
    %65 = vector.shape_cast %64 : vector<16xf32> to vector<16x1xf32>
    %cst_36 = arith.constant 3.200000e+01 : f32
    %66 = vector.broadcast %cst_36 : f32 to vector<16x1xf32>
    %67 = arith.divf %65, %66 : vector<16x1xf32>
    %68 = vector.broadcast %67 : vector<16x1xf32> to vector<16x32xf32>
    %69 = arith.subf %59, %68 : vector<16x32xf32>
    %70 = arith.mulf %69, %69 : vector<16x32xf32>
    %cst_37 = arith.constant dense<0.000000e+00> : vector<16xf32>
    %71 = vector.multi_reduction <add>, %70, %cst_37 [1] : vector<16x32xf32> to vector<16xf32>
    %72 = vector.shape_cast %71 : vector<16xf32> to vector<16x1xf32>
    %cst_38 = arith.constant 3.200000e+01 : f32
    %73 = vector.broadcast %cst_38 : f32 to vector<16x1xf32>
    %74 = arith.divf %72, %73 : vector<16x1xf32>
    %75 = vector.broadcast %67 : vector<16x1xf32> to vector<16x32xf32>
    %76 = arith.subf %59, %75 : vector<16x32xf32>
    %cst_39 = arith.constant 9.99999996E-13 : f32
    %77 = vector.broadcast %cst_39 : f32 to vector<16x1xf32>
    %78 = arith.addf %74, %77 : vector<16x1xf32>
    %79 = math.rsqrt %78 : vector<16x1xf32>
    %80 = vector.broadcast %79 : vector<16x1xf32> to vector<16x32xf32>
    %81 = arith.mulf %76, %80 : vector<16x32xf32>
    %82 = vector.broadcast %61 : vector<1x32xf32> to vector<16x32xf32>
    %83 = arith.mulf %81, %82 : vector<16x32xf32>
    %84 = vector.broadcast %63 : vector<1x32xf32> to vector<16x32xf32>
    %85 = arith.addf %83, %84 : vector<16x32xf32>
    %c0_40 = arith.constant 0 : index
    %c0_41 = arith.constant 0 : index
    %c0_42 = arith.constant 0 : index
    %86 = vector.load %arg12[%c0_40, %c0_41, %c0_42] : memref<1x32x64xf32, #tpu.memory_space<vmem>>, vector<1x32x64xf32>
    %87 = vector.shape_cast %86 : vector<1x32x64xf32> to vector<32x64xf32>
    %cst_43 = arith.constant dense<0.000000e+00> : vector<16x64xf32>
    %88 = tpu.matmul %85, %87, %cst_43 {dimension_numbers = #tpu.dot_dimension_numbers<[1], [0], [0], [1], [0, 0, 1, 1], [], []>} : vector<16x32xf32>, vector<32x64xf32>, vector<16x64xf32> -> vector<16x64xf32>
    %c0_44 = arith.constant 0 : index
    %c0_45 = arith.constant 0 : index
    %c0_46 = arith.constant 0 : index
    %89 = vector.load %arg13[%c0_44, %c0_45, %c0_46] : memref<1x1x64xf32, #tpu.memory_space<vmem>>, vector<1x1x64xf32>
    %90 = vector.shape_cast %89 : vector<1x1x64xf32> to vector<1x64xf32>
    %91 = vector.broadcast %90 : vector<1x64xf32> to vector<16x64xf32>
    %92 = arith.addf %88, %91 : vector<16x64xf32>
    %93 = arith.mulf %92, %92 : vector<16x64xf32>
    %94 = arith.mulf %92, %93 : vector<16x64xf32>
    %cst_47 = arith.constant 4.471500e-02 : f32
    %95 = vector.broadcast %cst_47 : f32 to vector<16x64xf32>
    %96 = arith.mulf %95, %94 : vector<16x64xf32>
    %97 = arith.addf %92, %96 : vector<16x64xf32>
    %cst_48 = arith.constant 0.797884583 : f32
    %98 = vector.broadcast %cst_48 : f32 to vector<16x64xf32>
    %99 = arith.mulf %98, %97 : vector<16x64xf32>
    %100 = math.tanh %99 : vector<16x64xf32>
    %cst_49 = arith.constant 1.000000e+00 : f32
    %101 = vector.broadcast %cst_49 : f32 to vector<16x64xf32>
    %102 = arith.addf %101, %100 : vector<16x64xf32>
    %cst_50 = arith.constant 5.000000e-01 : f32
    %103 = vector.broadcast %cst_50 : f32 to vector<16x64xf32>
    %104 = arith.mulf %103, %102 : vector<16x64xf32>
    %105 = arith.mulf %92, %104 : vector<16x64xf32>
    %c0_51 = arith.constant 0 : index
    %c0_52 = arith.constant 0 : index
    %c0_53 = arith.constant 0 : index
    %106 = vector.load %arg14[%c0_51, %c0_52, %c0_53] : memref<1x64x32xf32, #tpu.memory_space<vmem>>, vector<1x64x32xf32>
    %107 = vector.shape_cast %106 : vector<1x64x32xf32> to vector<64x32xf32>
    %cst_54 = arith.constant dense<0.000000e+00> : vector<16x32xf32>
    %108 = tpu.matmul %105, %107, %cst_54 {dimension_numbers = #tpu.dot_dimension_numbers<[1], [0], [0], [1], [0, 0, 1, 1], [], []>} : vector<16x64xf32>, vector<64x32xf32>, vector<16x32xf32> -> vector<16x32xf32>
    %c0_55 = arith.constant 0 : index
    %c0_56 = arith.constant 0 : index
    %c0_57 = arith.constant 0 : index
    %109 = vector.load %arg15[%c0_55, %c0_56, %c0_57] : memref<1x1x32xf32, #tpu.memory_space<vmem>>, vector<1x1x32xf32>
    %110 = vector.shape_cast %109 : vector<1x1x32xf32> to vector<1x32xf32>
    %111 = vector.broadcast %110 : vector<1x32xf32> to vector<16x32xf32>
    %112 = arith.addf %108, %111 : vector<16x32xf32>
    %113 = arith.addf %112, %85 : vector<16x32xf32>
    %c0_58 = arith.constant 0 : index
    %c0_59 = arith.constant 0 : index
    %c0_60 = arith.constant 0 : index
    %114 = vector.load %arg16[%c0_58, %c0_59, %c0_60] : memref<1x1x32xf32, #tpu.memory_space<vmem>>, vector<1x1x32xf32>
    %115 = vector.shape_cast %114 : vector<1x1x32xf32> to vector<1x32xf32>
    %c0_61 = arith.constant 0 : index
    %c0_62 = arith.constant 0 : index
    %c0_63 = arith.constant 0 : index
    %116 = vector.load %arg17[%c0_61, %c0_62, %c0_63] : memref<1x1x32xf32, #tpu.memory_space<vmem>>, vector<1x1x32xf32>
    %117 = vector.shape_cast %116 : vector<1x1x32xf32> to vector<1x32xf32>
    %cst_64 = arith.constant dense<0.000000e+00> : vector<16xf32>
    %118 = vector.multi_reduction <add>, %113, %cst_64 [1] : vector<16x32xf32> to vector<16xf32>
    %119 = vector.shape_cast %118 : vector<16xf32> to vector<16x1xf32>
    %cst_65 = arith.constant 3.200000e+01 : f32
    %120 = vector.broadcast %cst_65 : f32 to vector<16x1xf32>
    %121 = arith.divf %119, %120 : vector<16x1xf32>
    %122 = vector.broadcast %121 : vector<16x1xf32> to vector<16x32xf32>
    %123 = arith.subf %113, %122 : vector<16x32xf32>
    %124 = arith.mulf %123, %123 : vector<16x32xf32>
    %cst_66 = arith.constant dense<0.000000e+00> : vector<16xf32>
    %125 = vector.multi_reduction <add>, %124, %cst_66 [1] : vector<16x32xf32> to vector<16xf32>
    %126 = vector.shape_cast %125 : vector<16xf32> to vector<16x1xf32>
    %cst_67 = arith.constant 3.200000e+01 : f32
    %127 = vector.broadcast %cst_67 : f32 to vector<16x1xf32>
    %128 = arith.divf %126, %127 : vector<16x1xf32>
    %129 = vector.broadcast %121 : vector<16x1xf32> to vector<16x32xf32>
    %130 = arith.subf %113, %129 : vector<16x32xf32>
    %cst_68 = arith.constant 9.99999996E-13 : f32
    %131 = vector.broadcast %cst_68 : f32 to vector<16x1xf32>
    %132 = arith.addf %128, %131 : vector<16x1xf32>
    %133 = math.rsqrt %132 : vector<16x1xf32>
    %134 = vector.broadcast %133 : vector<16x1xf32> to vector<16x32xf32>
    %135 = arith.mulf %130, %134 : vector<16x32xf32>
    %136 = vector.broadcast %115 : vector<1x32xf32> to vector<16x32xf32>
    %137 = arith.mulf %135, %136 : vector<16x32xf32>
    %138 = vector.broadcast %117 : vector<1x32xf32> to vector<16x32xf32>
    %139 = arith.addf %137, %138 : vector<16x32xf32>
    %c0_69 = arith.constant 0 : index
    %c0_70 = arith.constant 0 : index
    %140 = vector.load %arg23[%c0_69, %c0_70] : memref<16x32xf32, #tpu.memory_space<vmem>>, vector<16x32xf32>
    tpu.vector_store %arg23[%c0_69, %c0_70], %139 {strides = array<i32>} : memref<16x32xf32, #tpu.memory_space<vmem>>, vector<16x32xf32>,
    %c1_i32 = arith.constant 1 : i32
    %141 = arith.cmpi eq, %arg0, %c1_i32 : i32
    %142 = arith.extui %141 : i1 to i32
    %c0_i32_71 = arith.constant 0 : i32
    %143 = arith.cmpi ne, %142, %c0_i32_71 : i32
    scf.if %143 {
      %c0_72 = arith.constant 0 : index
      %c0_73 = arith.constant 0 : index
      %144 = vector.load %arg3[%c0_72, %c0_73] : memref<2x16xf32, #tpu.memory_space<vmem>>, vector<2x16xf32>
      %cst_74 = arith.constant dense<0.000000e+00> : vector<2x32xf32>
      %145 = tpu.matmul %144, %139, %cst_74 {dimension_numbers = #tpu.dot_dimension_numbers<[1], [0], [0], [1], [0, 0, 1, 1], [], []>} : vector<2x16xf32>, vector<16x32xf32>, vector<2x32xf32> -> vector<2x32xf32>
      %c0_75 = arith.constant 0 : index
      %c0_76 = arith.constant 0 : index
      %146 = vector.load %arg18[%c0_75, %c0_76] : memref<32x32xf32, #tpu.memory_space<vmem>>, vector<32x32xf32>
      %cst_77 = arith.constant dense<0.000000e+00> : vector<2x32xf32>
      %147 = tpu.matmul %145, %146, %cst_77 {dimension_numbers = #tpu.dot_dimension_numbers<[1], [0], [0], [1], [0, 0, 1, 1], [], []>} : vector<2x32xf32>, vector<32x32xf32>, vector<2x32xf32> -> vector<2x32xf32>
      %c0_78 = arith.constant 0 : index
      %c0_79 = arith.constant 0 : index
      %148 = vector.load %arg19[%c0_78, %c0_79] : memref<1x32xf32, #tpu.memory_space<vmem>>, vector<1x32xf32>
      %149 = vector.broadcast %148 : vector<1x32xf32> to vector<2x32xf32>
      %150 = arith.addf %147, %149 : vector<2x32xf32>
      %151 = math.tanh %150 : vector<2x32xf32>
      %c0_80 = arith.constant 0 : index
      %c0_81 = arith.constant 0 : index
      %152 = vector.load %arg20[%c0_80, %c0_81] : memref<32x3xf32, #tpu.memory_space<vmem>>, vector<32x3xf32>
      %cst_82 = arith.constant dense<0.000000e+00> : vector<2x3xf32>
      %153 = tpu.matmul %151, %152, %cst_82 {dimension_numbers = #tpu.dot_dimension_numbers<[1], [0], [0], [1], [0, 0, 1, 1], [], []>} : vector<2x32xf32>, vector<32x3xf32>, vector<2x3xf32> -> vector<2x3xf32>
      %c0_83 = arith.constant 0 : index
      %c0_84 = arith.constant 0 : index
      %154 = vector.load %arg21[%c0_83, %c0_84] : memref<1x3xf32, #tpu.memory_space<vmem>>, vector<1x3xf32>
      %155 = vector.broadcast %154 : vector<1x3xf32> to vector<2x3xf32>
      %156 = arith.addf %153, %155 : vector<2x3xf32>
      %cst_85 = arith.constant dense<0xFF800000> : vector<2xf32>
      %157 = vector.multi_reduction <maximumf>, %156, %cst_85 [1] : vector<2x3xf32> to vector<2xf32>
      %158 = vector.shape_cast %157 : vector<2xf32> to vector<2x1xf32>
      %159 = vector.broadcast %158 : vector<2x1xf32> to vector<2x3xf32>
      %160 = arith.subf %156, %159 : vector<2x3xf32>
      %161 = math.exp %160 : vector<2x3xf32>
      %cst_86 = arith.constant dense<0.000000e+00> : vector<2xf32>
      %162 = vector.multi_reduction <add>, %161, %cst_86 [1] : vector<2x3xf32> to vector<2xf32>
      %163 = vector.shape_cast %162 : vector<2xf32> to vector<2x1xf32>
      %164 = vector.broadcast %163 : vector<2x1xf32> to vector<2x3xf32>
      %165 = arith.divf %161, %164 : vector<2x3xf32>
      %c0_87 = arith.constant 0 : index
      %c0_88 = arith.constant 0 : index
      %166 = vector.load %arg22[%c0_87, %c0_88] : memref<2x3xf32, #tpu.memory_space<vmem>>, vector<2x3xf32>
      tpu.vector_store %arg22[%c0_87, %c0_88], %165 {strides = array<i32>} : memref<2x3xf32, #tpu.memory_space<vmem>>, vector<2x3xf32>,
    } else {
    }
    return
  }
  func.func @transform_0(%arg0: i32) -> (i32, i32) {
    %c0_i32 = arith.constant 0 : i32
    %c0_i32_0 = arith.constant 0 : i32
    %c0_i32_1 = arith.constant 0 : i32
    return %c0_i32, %c0_i32_0 : i32, i32
  }
  func.func @transform_1(%arg0: i32) -> (i32, i32) {
    %c0_i32 = arith.constant 0 : i32
    %c0_i32_0 = arith.constant 0 : i32
    %c0_i32_1 = arith.constant 0 : i32
    return %c0_i32, %c0_i32_0 : i32, i32
  }
  func.func @transform_2(%arg0: i32) -> (i32, i32) {
    %c0_i32 = arith.constant 0 : i32
    %c0_i32_0 = arith.constant 0 : i32
    %c0_i32_1 = arith.constant 0 : i32
    return %c0_i32, %c0_i32_0 : i32, i32
  }
  func.func @transform_3(%arg0: i32) -> (i32, i32) {
    %c0_i32 = arith.constant 0 : i32
    %c0_i32_0 = arith.constant 0 : i32
    %c0_i32_1 = arith.constant 0 : i32
    return %c0_i32, %c0_i32_0 : i32, i32
  }
  func.func @transform_4(%arg0: i32) -> (i32, i32) {
    %c0_i32 = arith.constant 0 : i32
    %c0_i32_0 = arith.constant 0 : i32
    %c0_i32_1 = arith.constant 0 : i32
    return %c0_i32, %c0_i32_0 : i32, i32
  }
  func.func @transform_5(%arg0: i32) -> (i32, i32, i32) {
    %c0_i32 = arith.constant 0 : i32
    %c0_i32_0 = arith.constant 0 : i32
    %c0_i32_1 = arith.constant 0 : i32
    return %arg0, %c0_i32, %c0_i32_0 : i32, i32, i32
  }
  func.func @transform_6(%arg0: i32) -> (i32, i32, i32) {
    %c0_i32 = arith.constant 0 : i32
    %c0_i32_0 = arith.constant 0 : i32
    %c0_i32_1 = arith.constant 0 : i32
    return %arg0, %c0_i32, %c0_i32_0 : i32, i32, i32
  }
  func.func @transform_7(%arg0: i32) -> (i32, i32, i32) {
    %c0_i32 = arith.constant 0 : i32
    %c0_i32_0 = arith.constant 0 : i32
    %c0_i32_1 = arith.constant 0 : i32
    return %arg0, %c0_i32, %c0_i32_0 : i32, i32, i32
  }
  func.func @transform_8(%arg0: i32) -> (i32, i32, i32) {
    %c0_i32 = arith.constant 0 : i32
    %c0_i32_0 = arith.constant 0 : i32
    %c0_i32_1 = arith.constant 0 : i32
    return %arg0, %c0_i32, %c0_i32_0 : i32, i32, i32
  }
  func.func @transform_9(%arg0: i32) -> (i32, i32, i32) {
    %c0_i32 = arith.constant 0 : i32
    %c0_i32_0 = arith.constant 0 : i32
    %c0_i32_1 = arith.constant 0 : i32
    return %arg0, %c0_i32, %c0_i32_0 : i32, i32, i32
  }
  func.func @transform_10(%arg0: i32) -> (i32, i32, i32) {
    %c0_i32 = arith.constant 0 : i32
    %c0_i32_0 = arith.constant 0 : i32
    %c0_i32_1 = arith.constant 0 : i32
    return %arg0, %c0_i32, %c0_i32_0 : i32, i32, i32
  }
  func.func @transform_11(%arg0: i32) -> (i32, i32, i32) {
    %c0_i32 = arith.constant 0 : i32
    %c0_i32_0 = arith.constant 0 : i32
    %c0_i32_1 = arith.constant 0 : i32
    return %arg0, %c0_i32, %c0_i32_0 : i32, i32, i32
  }
  func.func @transform_12(%arg0: i32) -> (i32, i32, i32) {
    %c0_i32 = arith.constant 0 : i32
    %c0_i32_0 = arith.constant 0 : i32
    %c0_i32_1 = arith.constant 0 : i32
    return %arg0, %c0_i32, %c0_i32_0 : i32, i32, i32
  }
  func.func @transform_13(%arg0: i32) -> (i32, i32, i32) {
    %c0_i32 = arith.constant 0 : i32
    %c0_i32_0 = arith.constant 0 : i32
    %c0_i32_1 = arith.constant 0 : i32
    return %arg0, %c0_i32, %c0_i32_0 : i32, i32, i32
  }
  func.func @transform_14(%arg0: i32) -> (i32, i32, i32) {
    %c0_i32 = arith.constant 0 : i32
    %c0_i32_0 = arith.constant 0 : i32
    %c0_i32_1 = arith.constant 0 : i32
    return %arg0, %c0_i32, %c0_i32_0 : i32, i32, i32
  }
  func.func @transform_15(%arg0: i32) -> (i32, i32, i32) {
    %c0_i32 = arith.constant 0 : i32
    %c0_i32_0 = arith.constant 0 : i32
    %c0_i32_1 = arith.constant 0 : i32
    return %arg0, %c0_i32, %c0_i32_0 : i32, i32, i32
  }
  func.func @transform_16(%arg0: i32) -> (i32, i32, i32) {
    %c0_i32 = arith.constant 0 : i32
    %c0_i32_0 = arith.constant 0 : i32
    %c0_i32_1 = arith.constant 0 : i32
    return %arg0, %c0_i32, %c0_i32_0 : i32, i32, i32
  }
  func.func @transform_17(%arg0: i32) -> (i32, i32) {
    %c0_i32 = arith.constant 0 : i32
    %c0_i32_0 = arith.constant 0 : i32
    %c0_i32_1 = arith.constant 0 : i32
    return %c0_i32, %c0_i32_0 : i32, i32
  }
  func.func @transform_18(%arg0: i32) -> (i32, i32) {
    %c0_i32 = arith.constant 0 : i32
    %c0_i32_0 = arith.constant 0 : i32
    %c0_i32_1 = arith.constant 0 : i32
    return %c0_i32, %c0_i32_0 : i32, i32
  }
  func.func @transform_19(%arg0: i32) -> (i32, i32) {
    %c0_i32 = arith.constant 0 : i32
    %c0_i32_0 = arith.constant 0 : i32
    %c0_i32_1 = arith.constant 0 : i32
    return %c0_i32, %c0_i32_0 : i32, i32
  }
  func.func @transform_20(%arg0: i32) -> (i32, i32) {
    %c0_i32 = arith.constant 0 : i32
    %c0_i32_0 = arith.constant 0 : i32
    %c0_i32_1 = arith.constant 0 : i32
    return %c0_i32, %c0_i32_0 : i32, i32
  }
  func.func @transform_21(%arg0: i32) -> (i32, i32) {
    %c0_i32 = arith.constant 0 : i32
    %c0_i32_0 = arith.constant 0 : i32
    %c0_i32_1 = arith.constant 0 : i32
    return %c0_i32, %c0_i32_0 : i32, i32
  }
}

</mosaic_0001>

<bundles_post_ra>
// kernel: nli_infer_bert_forward.1
= control target key start
LH: loop header
LB: loop body
LE: loop exit
PB: predicated region body
PF: predicated region fallthrough
CT: control target
= control target key end

     0   :  { %s3081_s0 = inlined_call_operand.vmem [shape: f32[16,32], index: 0, kind: input, shape index: {}]   ;;  %s3082_s1 = inlined_call_operand.vmem [shape: f32[16,16], index: 1, kind: input, shape index: {}]   ;;  %s3083_s2 = inlined_call_operand.vmem [shape: f32[2,16], index: 2, kind: input, shape index: {}]   ;;  %s3084_s3 = inlined_call_operand.vmem [shape: f32[1,32], index: 3, kind: input, shape index: {}]   ;;  %s3085_s4 = inlined_call_operand.vmem [shape: f32[1,32], index: 4, kind: input, shape index: {}]   ;;  %s3086_s5 = inlined_call_operand.vmem [shape: f32[2,32,96], index: 5, kind: input, shape index: {}]   ;;  %s3087_s6 = inlined_call_operand.vmem [shape: f32[2,1,96], index: 6, kind: input, shape index: {}]   ;;  %s3088_s7 = inlined_call_operand.vmem [shape: f32[2,32,32], index: 7, kind: input, shape index: {}]   ;;  %s3089_s8 = inlined_call_operand.vmem [shape: f32[2,1,32], index: 8, kind: input, shape index: {}]   ;;  %s3090_s9 = inlined_call_operand.vmem [shape: f32[2,1,32], index: 9, kind: input, shape index: {}]   ;;  %s3091_s10 = inlined_call_operand.vmem [shape: f32[2,1,32], index: 10, kind: input, shape index: {}]   ;;  %s3092_s11 = inlined_call_operand.vmem [shape: f32[2,32,64], index: 11, kind: input, shape index: {}]   ;;  %s3093_s12 = inlined_call_operand.vmem [shape: f32[2,1,64], index: 12, kind: input, shape index: {}]   ;;  %s3094_s13 = inlined_call_operand.vmem [shape: f32[2,64,32], index: 13, kind: input, shape index: {}]   ;;  %s3095_s14 = inlined_call_operand.vmem [shape: f32[2,1,32], index: 14, kind: input, shape index: {}]   ;;  %s3096_s15 = inlined_call_operand.vmem [shape: f32[2,1,32], index: 15, kind: input, shape index: {}]   ;;  %s3097_s16 = inlined_call_operand.vmem [shape: f32[2,1,32], index: 16, kind: input, shape index: {}]   ;;  %s3098_s17 = inlined_call_operand.vmem [shape: f32[32,32], index: 17, kind: input, shape index: {}]   ;;  %s3099_s18 = inlined_call_operand.vmem [shape: f32[1,32], index: 18, kind: input, shape index: {}]   ;;  %s3100_s19 = inlined_call_operand.vmem [shape: f32[32,3], index: 19, kind: input, shape index: {}]   ;;  %s3101_s20 = inlined_call_operand.vmem [shape: f32[1,3], index: 20, kind: input, shape index: {}]   ;;  %s3102_s21 = inlined_call_operand.hbm [shape: f32[2,3], index: 21, kind: output, shape index: {}]  }
   0x1   :  { %3109 = sst [smem:[#allocation7_spill]] %s3081_s0 }
   0x2   :  { %3110 = sst [smem:[#allocation8_spill]] %s3082_s1 }
   0x3   :  { %3111 = sst [smem:[#allocation9_spill]] %s3083_s2 }
   0x4   :  { %3112 = sst [smem:[#allocation10_spill]] %s3084_s3 }
   0x5   :  { %3113 = sst [smem:[#allocation11_spill]] %s3085_s4 }
   0x6   :  { %3114 = sst [smem:[#allocation12_spill]] %s3086_s5 }
   0x7   :  { %3115 = sst [smem:[#allocation13_spill]] %s3088_s7 }
   0x8   :  { %3116 = sst [smem:[#allocation14_spill]] %s3098_s17 }
   0x9   :  { %3117 = sst [smem:[#allocation15_spill]] %s3099_s18 }
   0xa   :  { %3118 = sst [smem:[#allocation16_spill]] %s3100_s19 }
   0xb   :  { %3119 = sst [smem:[#allocation17_spill]] %s3101_s20 }
   0xc   :  { %3120 = sst [smem:[#allocation18_spill]] %s3102_s21 }
   0xd   :  { %26 = vsyncpa [#allocation4], 0  ;;  %s2809_s2 = smov 0  }
   0xe LB: > { %3121 = sst [smem:[#allocation6_spill]] %s2688_s2  ;;  %s2815_s25 = sadd.s32 4294967295, %s2688_s2   ;;  %s2688_s2 = sphi %s2809_s2, %s32_s2  }
   0xf   : > { %p2267_p0 = scmp.ge.s32.totalorder %s2688_s2, 1  ;;  %p677_p1 = scmp.lt.s32.totalorder %s2688_s2, 3 }
  0x11   : > { %p678_p2 = pnand %p2267_p0, %p677_p1 }
  0x12   : > { %p771_p3 = scmp.lt.s32.totalorder (!%p678_p2), %s2815_s25, 1  ;;  %s3122_s30 = sld [smem:[#allocation12_spill]] (!%p678_p2) }
  0x13   : > { %681 = sbr.rel (%p678_p2) target bundleno = 3778 (0xec2), region = 104  ;;  %s3123_s7 = sld [smem:[#allocation13_spill]] (!%p678_p2) }
  0x14   : > { %p2276_p4 = scmp.ne.s32.totalorder (!%p678_p2), %s2815_s25, 0 }
  0x1a   : > { %s2821_s26 = scalar_select %p771_p3, %s2815_s25, 1 }
  0x1b   : > { %818 = sbr.rel (%p2276_p4) target bundleno = 352 (0x160), region = 108  ;;  %s3124_s2 = sld [smem:[#allocation7_spill]] (!%p2276_p4)  ;;  %vm823_vm0 = vcmask (!%p2276_p4), 261120  }
  0x1c   : > { %s2319_s27 = sshll.u32 %s2821_s26, 5  ;;  %s2322_s17 = sshll.u32 %s2821_s26, 6 }
  0x1d   : > { %s2831_s5 = scalar_lea.vmem %s3122_s30, %s2319_s27  ;;  %s2836_s1 = scalar_lea.vmem %s3123_s7, %s2319_s27 }
  0x1e   : > { %s2853_s30 = scalar_lea.vmem %s3092_s11, %s2319_s27  ;;  %s2863_s21 = scalar_lea.vmem %s3094_s13, %s2322_s17 }
  0x1f   : > { %s808_s3 = scalar_lea.vmem %s3095_s14, %s2821_s26  ;;  %s811_s0 = scalar_lea.vmem %s3096_s15, %s2821_s26 }
  0x20   : > { %s814_s19 = scalar_lea.vmem %s3097_s16, %s2821_s26  ;;  %s3126_s18 = sld [smem:[#allocation10_spill]] (!%p2276_p4) }
  0x21   : > { %s3125_s24 = smov (!%p2276_p4), %s3124_s2  ;;  %v819_v0 = vld [vmem:[%s3124_s2] sm:$0xff] (!%p2276_p4)  ;;  %s3127_s27 = sld [smem:[#allocation11_spill]] (!%p2276_p4) }
  0x22   : > { %v820_v1 = vld [vmem:[%s3125_s24 + $0x8] sm:$0xff]  ;;  %v824_v2 = vsel %vm823_vm0, %v819_v0, 0.0 }
  0x23   : > { %825 = vadd.xlane.f32.xlu0 %v824_v2  ;;  %v827_v3 = vsel %vm823_vm0, %v820_v1, 0.0 }
  0x26   : > { %v2277_v21 = vld [vmem:[%s3126_s18] ss:$0 sm:$0xff] }
  0x27   : > { %828 = vadd.xlane.f32.xlu0 %v827_v3  ;;  %v2278_v23 = vld [vmem:[%s3127_s27] ss:$0 sm:$0xff] }
  0xb0   : > { %v826_v4 = vpop.xlane.xlu0 %825 }
  0xb1   : > { %v831_v5 = vmul.f32 0.03125, %v826_v4 }
  0xb3   : > { %v833_v6 = vsub.f32 %v819_v0, %v831_v5 }
  0xb4   : > { %v829_v7 = vpop.xlane.xlu0 %828 }
  0xb5   : > { %v832_v8 = vmul.f32 0.03125, %v829_v7  ;;  %v835_v9 = vmul.f32 %v833_v6, %v833_v6 }
  0xb7   : > { %v834_v10 = vsub.f32 %v820_v1, %v832_v8  ;;  %v837_v11 = vsel %vm823_vm0, %v835_v9, 0.0 }
  0xb8   : > { %838 = vadd.xlane.f32.xlu1 %v837_v11 }
  0xb9   : > { %v836_v12 = vmul.f32 %v834_v10, %v834_v10 }
  0xbb   : > { %v840_v13 = vsel %vm823_vm0, %v836_v12, 0.0 }
  0xbc   : > { %841 = vadd.xlane.f32.xlu1 %v840_v13 }
 0x145   : > { %v839_v14 = vpop.xlane.xlu1 %838 }
 0x146   : > { %v843_v15 = vmul.f32 0.03125, %v839_v14 }
 0x148   : > { %v845_v16 = vadd.f32 1e-12, %v843_v15 }
 0x149   : > { %v842_v17 = vpop.xlane.xlu1 %841 }
 0x14a   : > { %2594 = vrsqrt.f32 %v845_v16  ;;  %v844_v18 = vmul.f32 0.03125, %v842_v17 }
 0x14c   : > { %v846_v19 = vadd.f32 1e-12, %v844_v18 }
 0x14e   : > { %2596 = vrsqrt.f32 %v846_v19 }
 0x154   : > { %v2595_v20 = vpop.eup %2594 }
 0x155   : > { %v849_v22 = vmul.f32 %v2595_v20, %v833_v6 }
 0x157   : > { %v857_v24 = vmul.f32 %v2277_v21, %v849_v22 }
 0x158   : > { %v2597_v25 = vpop.eup %2596 }
 0x159   : > { %v865_v26 = vadd.f32 %v2278_v23, %v857_v24  ;;  %v850_v27 = vmul.f32 %v2597_v25, %v834_v10 }
 0x15b   : > { %867 = vst.msk [vmem:[#allocation2] sm:$0xff] %vm823_vm0, %v865_v26  ;;  %v858_v28 = vmul.f32 %v2277_v21, %v850_v27 }
 0x15d   : > { %v866_v29 = vadd.f32 %v2278_v23, %v858_v28 }
 0x15f   : > { %868 = vst.msk [vmem:[#allocation2 + $0x8] sm:$0xff] %vm823_vm0, %v866_v29 }
 0x160 PF: > { %v873_v30 = vld [vmem:[%s2831_s5] sm:$0xff]  ;;  %v874_v31 = vld [vmem:[%s2831_s5 + $0x8] sm:$0xff]  ;;  %v875_v32 = vld [vmem:[%s2831_s5 + $0x10] sm:$0xff]  ;;  %vm884_vm1 = vcmask 261120   ;;  %s3128_s23 = scalar_lea.vmem %s3087_s6, %s2821_s26  ;;  %vm976_vm2 = vcmask 130048   ;;  %s2691_s2 = smov 96  }
 0x161   : > { %v2494_v33 = vpack.c.bf16 %v874_v31, %v873_v30  ;;  %v876_v34 = vld [vmem:[%s2831_s5 + $0x18] sm:$0xff]  ;;  %v2279_v38 = vld [vmem:[%s3128_s23] ss:$0 sm:$0xff]  ;;  %s2690_s5 = smov 112   ;;  %s2692_s17 = smov 80   ;;  %vm2503_vm3 = vmpackc.low %vm976_vm2, %vm976_vm2  ;;  %vm1720_vm4 = vcmask 523264  }
 0x162   : > { %v2900_v35 = vld [vmem:[#allocation2] sm:$0xff]  ;;  %v2498_v36 = vpack.c.bf16 %v876_v34, %v875_v32  ;;  %s3129_s18 = sld [smem:[#allocation8_spill]]  ;;  %s2693_s27 = smov 64  }
 0x163   : > { %2390 = vmatprep.mubr.msk.f32.mxu1 %vm884_vm1, %v2900_v35  ;;  %2495 = vmatprep.subr.bf16.mxu1 %v2494_v33  ;;  %s2694_s4 = smov 48   ;;  %s3132_s29 = scalar_lea.vmem %s3091_s10, %s2821_s26 }
 0x164   : > { %2497 = vmatpush3.bf16.msra.mxu1 %v2494_v33  ;;  %p2309_p5 = scmp.ne.s32.totalorder %s2815_s25, 1 }
 0x165   : > { %2499 = vmatprep.subr.bf16.mxu1 %v2498_v36  ;;  %vm2696_vm5 = vmmov (!%p2309_p5), 0   ;;  %s3137_s22 = sld [smem:[#allocation16_spill]] (!%p2309_p5)  ;;  %s3138_s7 = sld [smem:[#allocation15_spill]] (!%p2309_p5)  ;;  %vm2097_vm6 = vcmask (!%p2309_p5), 17408  }
 0x166   : > { %v2904_v37 = vld [vmem:[#allocation2 + $0x8] sm:$0xff]  ;;  %s3139_s28 = sld [smem:[#allocation17_spill]] (!%p2309_p5) }
 0x168   : > { %2501 = vmatpush3.bf16.msra.mxu1 %v2498_v36  ;;  %v872_v55 = vld [vmem:[%s3129_s18 + $0x8] sm:$0xff]  ;;  %v871_v58 = vld [vmem:[%s3129_s18] sm:$0xff] }
 0x16b   : > { %2391 = vmatmul.mubr.msk.f32.vlgmr.msra.gmra.mrb[0].mxu1 %vm884_vm1, %v2904_v37 }
 0x23e   : > { %v2392_v39 = vpop.f32.mrb[0].mxu1 }
 0x23f   : > { %v963_v40 = vadd.f32 %v2392_v39, %v2279_v38  ;;  %v957_v41 = vpop.f32.mrb[1].mxu1 }
 0x240   : > { %v958_v42 = vadd.f32 %v2279_v38, %v957_v41 }
 0x242   : > { %1173 = vrot.lane.b32.xlu1 %v958_v42, %s2690_s5  ;;  %2397 = vmatprep.mubr.msk.f32.mxu1 %vm976_vm2, %v958_v42  ;;  %v2914_v43 = vpack.i.bf16 %v963_v40, %v958_v42 }
 0x244   : > { %2599 = vrot.lane.b32.xlu0 %v2914_v43, %s2691_s2  ;;  %s3134_s2 = sld [smem:[#allocation14_spill]] (!%p2309_p5) }
 0x246   : > { %1175 = vrot.lane.b32.xlu1 %v963_v40, %s2690_s5  ;;  %s3130_s5 = scalar_lea.vmem %s3089_s8, %s2821_s26 }
 0x248   : > { %2604 = vrot.lane.b32.xlu0 %v2914_v43, %s2692_s17 }
 0x2b4   : > { %v1174_v52 = vpop.permute.xlu1 %1173 }
 0x2b6   : > { %v2600_v44 = vpop.permute.xlu0 %2599 }
 0x2b7   : > { %v2602_v45 = vunpack.i.h.bf16 %v2600_v44  ;;  %v2601_v46 = vunpack.i.l.bf16 %v2600_v44 }
 0x2b8   : > { %v1176_v53 = vpop.permute.xlu1 %1175 }
 0x2b9   : > { %v2502_v47 = vpack.c.bf16 %v2602_v45, %v2601_v46 }
 0x2ba   : > { %v2605_v48 = vpop.permute.xlu0 %2604 }
 0x2bb   : > { %v2607_v49 = vunpack.i.h.bf16 %v2605_v48  ;;  %v2606_v50 = vunpack.i.l.bf16 %v2605_v48  ;;  %2504 = vmatprep.subr.msk.bf16.mxu1 %vm2503_vm3, %v2502_v47 }
 0x2bc   : > { %2507 = vmatpush3.bf16.xpose.msk.msra.mxu1 %vm2503_vm3, %v2502_v47 }
 0x2bd   : > { %v2512_v51 = vpack.c.bf16 %v2607_v49, %v2606_v50  ;;  %v968_v50 = vld [vmem:[%s2836_s1 + $0x10] sm:$0xff] }
 0x2bf   : > { %2514 = vmatprep.subr.msk.bf16.mxu1 %vm2503_vm3, %v2512_v51 }
 0x2c3   : > { %2398 = vmatmul.mubr.msk.f32.vlgmr.msra.gmra.mrb[2].mxu1 %vm976_vm2, %v963_v40 }
 0x2c4   : > { %2517 = vmatpush3.bf16.xpose.msk.msra.mxu1 %vm2503_vm3, %v2512_v51  ;;  %2411 = vmatprep.mubr.msk.f32.mxu1 %vm976_vm2, %v1174_v52  ;;  %v969_v51 = vld [vmem:[%s2836_s1 + $0x18] sm:$0xff] }
 0x2c5   : > { %v2522_v52 = vpack.c.bf16 %v969_v51, %v968_v50 }
 0x2cb   : > { %2412 = vmatmul.mubr.msk.f32.vlgmr.msra.gmra.mrb[4].mxu1 %vm976_vm2, %v1176_v53  ;;  %v966_v53 = vld [vmem:[%s2836_s1] sm:$0xff] }
 0x396   : > { %v2399_v54 = vpop.f32.mrb[2].mxu1 }
 0x397   : > { %v1061_v56 = vmul.f32 0.25, %v2399_v54  ;;  %v1051_v57 = vpop.f32.mrb[3].mxu1  ;;  %v967_v54 = vld [vmem:[%s2836_s1 + $0x8] sm:$0xff] }
 0x398   : > { %v1060_v59 = vmul.f32 0.25, %v1051_v57 }
 0x399   : > { %v1063_v60 = vadd.f32 %v1061_v56, %v872_v55 }
 0x39a   : > { %v1062_v61 = vadd.f32 %v1060_v59, %v871_v58 }
 0x39b   : > { %v1067_v62 = vsel %vm976_vm2, %v1063_v60, -inf }
 0x39c   : > { %1068 = vmax.xlane.f32.xlu1 %v1067_v62  ;;  %v1064_v63 = vsel %vm976_vm2, %v1062_v61, -inf }
 0x39d   : > { %1065 = vmax.xlane.f32.xlu0 %v1064_v63 }
 0x39e   : > { %v2413_v0 = vpop.f32.mrb[4].mxu1 }
 0x39f   : > { %v1255_v1 = vpop.f32.mrb[5].mxu1  ;;  %v1265_v2 = vmul.f32 0.25, %v2413_v0 }
 0x3a0   : > { %v1264_v3 = vmul.f32 0.25, %v1255_v1 }
 0x3a1   : > { %v1267_v6 = vadd.f32 %v1265_v2, %v872_v55  ;;  %v2526_v55 = vpack.c.bf16 %v967_v54, %v966_v53 }
 0x3a2   : > { %v1266_v4 = vadd.f32 %v1264_v3, %v871_v58 }
 0x3a3   : > { %v1271_v7 = vsel %vm976_vm2, %v1267_v6, -inf }
 0x3a4   : > { %v1268_v5 = vsel %vm976_vm2, %v1266_v4, -inf }
 0x3a5   : > { %1269 = vmax.xlane.f32.xlu0 %v1268_v5 }
 0x3a9   : > { %1272 = vmax.xlane.f32.xlu0 %v1271_v7 }
 0x429   : > { %v1069_v8 = vpop.xlane.xlu1 %1068 }
 0x42a   : > { %v1071_v9 = vsub.f32 %v1063_v60, %v1069_v8  ;;  %v1066_v10 = vpop.xlane.xlu0 %1065  ;;  %v2298_v60 = vld [vmem:[%s3130_s5] ss:$0 sm:$0xff] }
 0x42b   : > { %v1070_v11 = vsub.f32 %v1062_v61, %v1066_v10 }
 0x42c   : > { %v1074_v12 = vmul.f32 1.442695, %v1071_v9 }
 0x42d   : > { %v1072_v13 = vmul.f32 1.442695, %v1070_v11 }
 0x42e   : > { %2618 = vpow2.f32 %v1074_v12 }
 0x42f   : > { %2620 = vpow2.f32 %v1072_v13  ;;  %v1595_v13 = vld [vmem:[%s2853_s30] sm:$0xff] }
 0x432   : > { %v1270_v14 = vpop.xlane.xlu0 %1269 }
 0x433   : > { %v1274_v15 = vsub.f32 %v1266_v4, %v1270_v14  ;;  %v1596_v14 = vld [vmem:[%s2853_s30 + $0x8] sm:$0xff] }
 0x435   : > { %v1276_v16 = vmul.f32 1.442695, %v1274_v15  ;;  %v2530_v15 = vpack.c.bf16 %v1596_v14, %v1595_v13 }
 0x436   : > { %v1273_v17 = vpop.xlane.xlu0 %1272 }
 0x437   : > { %2622 = vpow2.f32 %v1276_v16  ;;  %v1275_v18 = vsub.f32 %v1267_v6, %v1273_v17  ;;  %v1597_v16 = vld [vmem:[%s2853_s30 + $0x10] sm:$0xff]  ;;  %v1598_v17 = vld [vmem:[%s2853_s30 + $0x18] sm:$0xff]  ;;  %2531 = vmatprep.subr.bf16.mxu1 %v2530_v15  ;;  %s3131_s30 = scalar_lea.vmem %s3090_s9, %s2821_s26 }
 0x438   : > { %v2619_v19 = vpop.eup %2618  ;;  %2533 = vmatpush3.bf16.msra.mxu1 %v2530_v15 }
 0x439   : > { %v2621_v20 = vpop.eup %2620  ;;  %v1278_v21 = vmul.f32 1.442695, %v1275_v18  ;;  %v1079_v22 = vsel %vm976_vm2, %v2619_v19, 0.0  ;;  %v2534_v18 = vpack.c.bf16 %v1598_v17, %v1597_v16 }
 0x43a   : > { %1080 = vadd.xlane.f32.xlu0 %v1079_v22  ;;  %v1076_v23 = vsel %vm976_vm2, %v2621_v20, 0.0 }
 0x43b   : > { %2624 = vpow2.f32 %v1278_v21  ;;  %1077 = vadd.xlane.f32.xlu1 %v1076_v23  ;;  %2535 = vmatprep.subr.bf16.mxu1 %v2534_v18 }
 0x43c   : > { %2537 = vmatpush3.bf16.msra.mxu1 %v2534_v18 }
 0x441   : > { %v2623_v24 = vpop.eup %2622 }
 0x442   : > { %v1280_v25 = vsel %vm976_vm2, %v2623_v24, 0.0 }
 0x443   : > { %1281 = vadd.xlane.f32.xlu1 %v1280_v25 }
 0x445   : > { %v2625_v26 = vpop.eup %2624 }
 0x446   : > { %v1283_v27 = vsel %vm976_vm2, %v2625_v26, 0.0 }
 0x447   : > { %1284 = vadd.xlane.f32.xlu0 %v1283_v27 }
 0x454   : > { %2609 = vrot.lane.b32.xlu1 %v2914_v43, %s2693_s27  ;;  %s3133_s27 = scalar_lea.vmem %s3093_s12, %s2821_s26 }
 0x45d   : > { %2614 = vrot.lane.b32.xlu0 %v2914_v43, %s2694_s4 }
 0x4c7   : > { %v1081_v29 = vpop.xlane.xlu0 %1080 }
 0x4c8   : > { %v1078_v28 = vpop.xlane.xlu1 %1077 }
 0x4c9   : > { %2626 = vrcp.f32 %v1078_v28 }
 0x4ca   : > { %2628 = vrcp.f32 %v1081_v29 }
 0x4d0   : > { %v1282_v30 = vpop.xlane.xlu1 %1281 }
 0x4d1   : > { %2630 = vrcp.f32 %v1282_v30  ;;  %v2300_v30 = vld [vmem:[%s3132_s29] ss:$0 sm:$0xff] }
 0x4d3   : > { %v2627_v31 = vpop.eup %2626 }
 0x4d4   : > { %v2610_v32 = vpop.permute.xlu1 %2609  ;;  %v1285_v33 = vpop.xlane.xlu0 %1284  ;;  %v1083_v34 = vmul.f32 %v2627_v31, %v2621_v20 }
 0x4d5   : > { %v2612_v36 = vunpack.i.h.bf16 %v2610_v32  ;;  %v2611_v38 = vunpack.i.l.bf16 %v2610_v32  ;;  %2632 = vrcp.f32 %v1285_v33  ;;  %v2629_v40 = vpop.eup %2628 }
 0x4d6   : > { %2404 = vmatprep.mubr.msk.f32.mxu0 %vm976_vm2, %v1083_v34  ;;  %v1085_v46 = vmul.f32 %v2629_v40, %v2619_v19  ;;  %v1707_v40 = vld [vmem:[%s2863_s21 + $0x10] sm:$0xff] }
 0x4d7   : > { %v2508_v39 = vpack.c.bf16 %v2612_v36, %v2611_v38  ;;  %v1705_v36 = vld [vmem:[%s2863_s21] sm:$0xff]  ;;  %v1706_v38 = vld [vmem:[%s2863_s21 + $0x8] sm:$0xff] }
 0x4d8   : > { %v2615_v41 = vpop.permute.xlu0 %2614 }
 0x4d9   : > { %v2617_v42 = vunpack.i.h.bf16 %v2615_v41  ;;  %v2616_v43 = vunpack.i.l.bf16 %v2615_v41  ;;  %2509 = vmatprep.subr.bf16.mxu0 %v2508_v39  ;;  %v1708_v41 = vld [vmem:[%s2863_s21 + $0x18] sm:$0xff] }
 0x4da   : > { %2511 = vmatpush3.bf16.msra.mxu0 %v2508_v39  ;;  %v2538_v39 = vpack.c.bf16 %v1706_v38, %v1705_v36  ;;  %v2308_v36 = vld [vmem:[%s814_s19] ss:$0 sm:$0xff] }
 0x4db   : > { %v2631_v44 = vpop.eup %2630  ;;  %v2518_v45 = vpack.c.bf16 %v2617_v42, %v2616_v43  ;;  %v2542_v42 = vpack.c.bf16 %v1708_v41, %v1707_v40  ;;  %v1709_v43 = vld [vmem:[%s2863_s21 + $0x20] sm:$0xff] }
 0x4dc   : > { %v1287_v47 = vmul.f32 %v2631_v44, %v2623_v24  ;;  %v1710_v44 = vld [vmem:[%s2863_s21 + $0x28] sm:$0xff] }
 0x4dd   : > { %2405 = vmatmul.mubr.msk.f32.vlgmr.msra.gmra.mrb[0].mxu0 %vm976_vm2, %v1085_v46  ;;  %2519 = vmatprep.subr.bf16.mxu0 %v2518_v45  ;;  %v1711_v46 = vld [vmem:[%s2863_s21 + $0x30] sm:$0xff] }
 0x4de   : > { %2521 = vmatpush3.bf16.msra.mxu0 %v2518_v45  ;;  %2418 = vmatprep.mubr.msk.f32.mxu0 %vm976_vm2, %v1287_v47  ;;  %v2546_v45 = vpack.c.bf16 %v1710_v44, %v1709_v43  ;;  %v1712_v47 = vld [vmem:[%s2863_s21 + $0x38] sm:$0xff]  ;;  %v1928_v44 = vld [vmem:[%s3134_s2] sm:$0xff] (!%p2309_p5)  ;;  %s3136_s21 = sld [smem:[#allocation9_spill]] (!%p2309_p5) }
 0x4df   : > { %v2633_v48 = vpop.eup %2632  ;;  %2523 = vmatprep.subr.bf16.mxu0 %v2522_v52 }
 0x4e0   : > { %v1289_v49 = vmul.f32 %v2633_v48, %v2625_v26  ;;  %v2299_v26 = vld [vmem:[%s3131_s30] ss:$0 sm:$0xff]  ;;  %v2550_v48 = vpack.c.bf16 %v1712_v47, %v1711_v46  ;;  %s3135_s30 = smov (!%p2309_p5), %s3134_s2  ;;  %v2697_v46 = vmov (!%p2309_p5), 0.0  }
 0x4e1   : > { %v1929_v47 = vld [vmem:[%s3135_s30 + $0x8] sm:$0xff] (!%p2309_p5) }
 0x4e2   : > { %2419 = vmatmul.mubr.msk.f32.vlgmr.msra.gmra.mrb[2].mxu0 %vm976_vm2, %v1289_v49  ;;  %v2301_v49 = vld [vmem:[%s3133_s27] ss:$0 sm:$0xff] }
 0x4e3   : > { %2525 = vmatpush3.bf16.msra.mxu0 %v2522_v52 }
 0x4e4   : > { %2527 = vmatprep.subr.bf16.mxu0 %v2526_v55 }
 0x5b0   : > { %v2406_v56 = vpop.f32.mrb[0].mxu0 }
 0x5b1   : > { %v1164_v57 = vpop.f32.mrb[1].mxu0 }
 0x5b5   : > { %v2420_v58 = vpop.f32.mrb[2].mxu0 }
 0x5b6   : > { %v1368_v59 = vpop.f32.mrb[3].mxu0 }
 0x5b7   : > { %2425 = vmatprep.mubr.msk.f32.mxu0 %vm976_vm2, %v1368_v59 }
 0x5b8   : > { %2426 = vmatmul.mubr.msk.f32.vlgmr.msra.gmra.mrb[4].mxu0 %vm976_vm2, %v2420_v58 }
 0x5b9   : > { %2529 = vmatpush3.bf16.msra.mxu0 %v2526_v55  ;;  %2432 = vmatprep.mubr.msk.f32.mxu0 %vm976_vm2, %v1164_v57 }
 0x5ba   : > { %2539 = vmatprep.subr.bf16.mxu0 %v2538_v39 }
 0x5c0   : > { %2433 = vmatmul.mubr.msk.f32.vlgmr.msra.gmra.mrb[4].mxu0 %vm976_vm2, %v2406_v56 }
 0x5c1   : > { %2541 = vmatpush3.bf16.msra.mxu0 %v2538_v39 }
 0x5c2   : > { %2543 = vmatprep.subr.bf16.mxu0 %v2542_v42 }
 0x5c5   : > { %2545 = vmatpush3.bf16.msra.mxu0 %v2542_v42 }
 0x5c6   : > { %2547 = vmatprep.subr.bf16.mxu0 %v2546_v45 }
 0x5c9   : > { %2549 = vmatpush3.bf16.msra.mxu0 %v2546_v45  ;;  %v2695_v45 = vmov (!%p2309_p5), 0.0|0.0  }
 0x5ca   : > { %2551 = vmatprep.subr.bf16.mxu0 %v2550_v48  ;;  %2557 = vmatprep.subr.bf16.mxu1 (!%p2309_p5), %v2695_v45 }
 0x5cd   : > { %2553 = vmatpush3.bf16.msra.mxu0 %v2550_v48  ;;  %v1930_v48 = vld [vmem:[%s3135_s30 + $0x10] sm:$0xff] (!%p2309_p5) }
 0x5ce   : > { %2554 = vmatprep.subr.bf16.mxu0 (!%p2309_p5), %v2695_v45 }
 0x693   : > { %v2434_v61 = vpop.f32.mrb[4].mxu0 }
 0x694   : > { %v1547_v62 = vadd.f32 %v2434_v61, %v2298_v60  ;;  %v1530_v63 = vpop.f32.mrb[5].mxu0 }
 0x695   : > { %v1546_v0 = vadd.f32 %v2298_v60, %v1530_v63 }
 0x696   : > { %v1549_v1 = vadd.f32 %v1547_v62, %v2904_v37 }
 0x697   : > { %v1548_v2 = vadd.f32 %v1546_v0, %v2900_v35 }
 0x698   : > { %v1555_v3 = vsel %vm884_vm1, %v1549_v1, 0.0 }
 0x699   : > { %1556 = vadd.xlane.f32.xlu0 %v1555_v3  ;;  %v1552_v4 = vsel %vm884_vm1, %v1548_v2, 0.0 }
 0x69a   : > { %1553 = vadd.xlane.f32.xlu1 %v1552_v4 }
 0x726   : > { %v1557_v5 = vpop.xlane.xlu0 %1556 }
 0x727   : > { %v1560_v6 = vmul.f32 0.03125, %v1557_v5  ;;  %v1554_v7 = vpop.xlane.xlu1 %1553 }
 0x728   : > { %v1559_v8 = vmul.f32 0.03125, %v1554_v7 }
 0x729   : > { %v1562_v9 = vsub.f32 %v1549_v1, %v1560_v6 }
 0x72a   : > { %v1561_v10 = vsub.f32 %v1548_v2, %v1559_v8  ;;  %v2304_v8 = vld [vmem:[%s808_s3] ss:$0 sm:$0xff] }
 0x72b   : > { %v1564_v11 = vmul.f32 %v1562_v9, %v1562_v9 }
 0x72c   : > { %v1563_v37 = vmul.f32 %v1561_v10, %v1561_v10 }
 0x72d   : > { %v1568_v35 = vsel %vm884_vm1, %v1564_v11, 0.0 }
 0x72e   : > { %1569 = vadd.xlane.f32.xlu0 %v1568_v35  ;;  %v1565_v12 = vsel %vm884_vm1, %v1563_v37, 0.0 }
 0x72f   : > { %1566 = vadd.xlane.f32.xlu1 %v1565_v12 }
 0x7bb   : > { %v1570_v19 = vpop.xlane.xlu0 %1569 }
 0x7bc   : > { %v1572_v20 = vmul.f32 0.03125, %v1570_v19  ;;  %v1567_v21 = vpop.xlane.xlu1 %1566 }
 0x7bd   : > { %v1571_v22 = vmul.f32 0.03125, %v1567_v21 }
 0x7be   : > { %v1574_v23 = vadd.f32 1e-12, %v1572_v20 }
 0x7bf   : > { %v1573_v24 = vadd.f32 1e-12, %v1571_v22 }
 0x7c0   : > { %2634 = vrsqrt.f32 %v1574_v23 }
 0x7c1   : > { %2636 = vrsqrt.f32 %v1573_v24 }
 0x7ca   : > { %v2635_v25 = vpop.eup %2634 }
 0x7cb   : > { %v2637_v27 = vpop.eup %2636  ;;  %v1578_v28 = vmul.f32 %v2635_v25, %v1562_v9 }
 0x7cc   : > { %v1577_v29 = vmul.f32 %v2637_v27, %v1561_v10 }
 0x7cd   : > { %v1586_v31 = vmul.f32 %v2299_v26, %v1578_v28 }
 0x7ce   : > { %v1585_v32 = vmul.f32 %v2299_v26, %v1577_v29 }
 0x7cf   : > { %v1594_v34 = vadd.f32 %v2300_v30, %v1586_v31 }
 0x7d0   : > { %v1593_v33 = vadd.f32 %v2300_v30, %v1585_v32  ;;  %v2307_v32 = vld [vmem:[%s811_s0] ss:$0 sm:$0xff] }
 0x7d2   : > { %2443 = vmatprep.mubr.msk.f32.mxu1 %vm884_vm1, %v1593_v33 }
 0x7d3   : > { %2444 = vmatmul.mubr.msk.f32.vlgmr.msra.gmra.mrb[6].mxu1 %vm884_vm1, %v1594_v34 }
 0x7d4   : > { %2480 = vmatprep.mubr.msk.f32.mxu1 (!%p2309_p5), %vm2696_vm5, %v2697_v46 }
 0x8a6   : > { %v2445_v50 = vpop.f32.mrb[6].mxu1 }
 0x8a7   : > { %v1684_v51 = vadd.f32 %v2445_v50, %v2301_v49  ;;  %v1678_v52 = vpop.f32.mrb[7].mxu1  ;;  %v1854_v50 = vld [vmem:[%s3136_s21] sm:$0x3] (!%p2309_p5) }
 0x8a8   : > { %v1679_v53 = vadd.f32 %v2301_v49, %v1678_v52  ;;  %v1931_v49 = vld [vmem:[%s3135_s30 + $0x18] sm:$0xff] (!%p2309_p5) }
 0x8a9   : > { %v1688_v54 = vmul.f32 %v1684_v51, %v1684_v51  ;;  %v2561_v52 = vpack.c.bf16 (!%p2309_p5), %v1931_v49, %v1930_v48 }
 0x8aa   : > { %v1687_v55 = vmul.f32 %v1679_v53, %v1679_v53 }
 0x8ab   : > { %v1690_v56 = vmul.f32 %v1688_v54, %v1684_v51 }
 0x8ac   : > { %v1689_v57 = vmul.f32 %v1687_v55, %v1679_v53  ;;  %v2013_v55 = vld [vmem:[%s3137_s22] sm:$0xff] (!%p2309_p5) }
 0x8ad   : > { %v1692_v58 = vmul.f32 0.044715, %v1690_v56  ;;  %v2014_v56 = vld [vmem:[%s3137_s22 + $0x8] sm:$0xff] (!%p2309_p5) }
 0x8ae   : > { %v1691_v59 = vmul.f32 0.044715, %v1689_v57  ;;  %v2015_v57 = vld [vmem:[%s3137_s22 + $0x10] sm:$0xff] (!%p2309_p5) }
 0x8af   : > { %v1694_v60 = vadd.f32 %v1692_v58, %v1684_v51  ;;  %v2564_v58 = vpack.c.bf16 (!%p2309_p5), %v2014_v56, %v2013_v55 }
 0x8b0   : > { %v1693_v61 = vadd.f32 %v1691_v59, %v1679_v53  ;;  %v2016_v59 = vld [vmem:[%s3137_s22 + $0x18] sm:$0xff] (!%p2309_p5) }
 0x8b1   : > { %v1696_v62 = vmul.f32 0.7978846, %v1694_v60  ;;  %v2567_v60 = vpack.c.bf16 (!%p2309_p5), %v2016_v59, %v2015_v57 }
 0x8b2   : > { %v1695_v63 = vmul.f32 0.7978846, %v1693_v61  ;;  %v2311_v61 = vld [vmem:[%s3138_s7] ss:$0 sm:$0xff] (!%p2309_p5) }
 0x8b3   : > { %2638 = vtanh.f32 %v1696_v62 }
 0x8b4   : > { %2640 = vtanh.f32 %v1695_v63 }
 0x8bd   : > { %v2639_v0 = vpop.eup %2638 }
 0x8be   : > { %v2641_v1 = vpop.eup %2640  ;;  %v1700_v2 = vadd.f32 1.0, %v2639_v0 }
 0x8bf   : > { %v1699_v3 = vadd.f32 1.0, %v2641_v1 }
 0x8c0   : > { %v1702_v4 = vmul.f32 0.5, %v1700_v2  ;;  %v2313_v2 = vld [vmem:[%s3139_s28] ss:$0 sm:$0xff] (!%p2309_p5) }
 0x8c1   : > { %v1701_v5 = vmul.f32 0.5, %v1699_v3 }
 0x8c2   : > { %v1704_v7 = vmul.f32 %v1702_v4, %v1684_v51  ;;  %v2558_v51 = vpack.c.bf16 (!%p2309_p5), %v1929_v47, %v1928_v44 }
 0x8c3   : > { %v1703_v6 = vmul.f32 %v1701_v5, %v1679_v53 }
 0x8c4   : > { %2559 = vmatpush3.bf16.msra.mxu1 (!%p2309_p5), %v2558_v51 }
 0x8c5   : > { %2462 = vmatprep.mubr.msk.f32.mxu0 %vm1720_vm4, %v1703_v6  ;;  %2560 = vmatprep.subr.bf16.mxu1 (!%p2309_p5), %v2695_v45 }
 0x8c6   : > { %2463 = vmatmul.mubr.msk.f32.vlgmr.msra.gmra.mrb[6].mxu0 %vm1720_vm4, %v1704_v7 }
 0x8c7   : > { %2469 = vmatprep.mubr.msk.f32.mxu0 (!%p2309_p5), %vm2696_vm5, %v2697_v46 }
 0x8c8   : > { %2562 = vmatpush3.bf16.msra.mxu1 (!%p2309_p5), %v2561_v52 }
 0x999   : > { %v2464_v9 = vpop.f32.mrb[6].mxu0 }
 0x99a   : > { %v1799_v10 = vadd.f32 %v2464_v9, %v2304_v8  ;;  %v1793_v11 = vpop.f32.mrb[7].mxu0 }
 0x99b   : > { %v1794_v37 = vadd.f32 %v2304_v8, %v1793_v11 }
 0x99c   : > { %v1803_v35 = vadd.f32 %v1799_v10, %v1594_v34 }
 0x99d   : > { %v1802_v12 = vadd.f32 %v1794_v37, %v1593_v33 }
 0x99e   : > { %v1809_v13 = vsel %vm884_vm1, %v1803_v35, 0.0 }
 0x99f   : > { %1810 = vadd.xlane.f32.xlu0 %v1809_v13  ;;  %v1806_v14 = vsel %vm884_vm1, %v1802_v12, 0.0 }
 0x9a0   : > { %1807 = vadd.xlane.f32.xlu1 %v1806_v14 }
 0xa2c   : > { %v1811_v15 = vpop.xlane.xlu0 %1810 }
 0xa2d   : > { %v1813_v16 = vmul.f32 0.03125, %v1811_v15  ;;  %v1808_v17 = vpop.xlane.xlu1 %1807 }
 0xa2e   : > { %v1812_v18 = vmul.f32 0.03125, %v1808_v17 }
 0xa2f   : > { %v1815_v19 = vsub.f32 %v1803_v35, %v1813_v16 }
 0xa30   : > { %v1814_v20 = vsub.f32 %v1802_v12, %v1812_v18 }
 0xa31   : > { %v1817_v21 = vmul.f32 %v1815_v19, %v1815_v19 }
 0xa32   : > { %v1816_v22 = vmul.f32 %v1814_v20, %v1814_v20 }
 0xa33   : > { %v1821_v23 = vsel %vm884_vm1, %v1817_v21, 0.0 }
 0xa34   : > { %1822 = vadd.xlane.f32.xlu0 %v1821_v23  ;;  %v1818_v24 = vsel %vm884_vm1, %v1816_v22, 0.0 }
 0xa35   : > { %1819 = vadd.xlane.f32.xlu1 %v1818_v24 }
 0xac1   : > { %v1823_v25 = vpop.xlane.xlu0 %1822 }
 0xac2   : > { %v1825_v26 = vmul.f32 0.03125, %v1823_v25  ;;  %v1820_v27 = vpop.xlane.xlu1 %1819 }
 0xac3   : > { %v1824_v28 = vmul.f32 0.03125, %v1820_v27 }
 0xac4   : > { %v1827_v29 = vadd.f32 1e-12, %v1825_v26 }
 0xac5   : > { %v1826_v30 = vadd.f32 1e-12, %v1824_v28 }
 0xac6   : > { %2642 = vrsqrt.f32 %v1827_v29 }
 0xac7   : > { %2644 = vrsqrt.f32 %v1826_v30 }
 0xad0   : > { %v2643_v31 = vpop.eup %2642 }
 0xad1   : > { %v2645_v33 = vpop.eup %2644  ;;  %v1831_v34 = vmul.f32 %v2643_v31, %v1815_v19 }
 0xad2   : > { %v1830_v38 = vmul.f32 %v2645_v33, %v1814_v20  ;;  %1853 = sbr.rel (%p2309_p5) target bundleno = 3747 (0xea3), region = 112 }
 0xad3   : > { %v1839_v39 = vmul.f32 %v2307_v32, %v1831_v34 }
 0xad4   : > { %v1838_v40 = vmul.f32 %v2307_v32, %v1830_v38 }
 0xad5   : > { %v1847_v41 = vadd.f32 %v2308_v36, %v1839_v39 }
 0xad6   : > { %v1846_v42 = vadd.f32 %v2308_v36, %v1838_v40 }
 0xad7   : > { %1849 = vst.msk [vmem:[#allocation2 + $0x8] sm:$0xff] %vm884_vm1, %v1847_v41 }
 0xad8   : > { %1848 = vst.msk [vmem:[#allocation2] sm:$0xff] %vm884_vm1, %v1846_v42  ;;  %v2555_v43 = vpack.c.bf16 (!%p2309_p5), %v1847_v41, %v1846_v42 }
 0xada   : > { %2556 = vmatpush3.bf16.msra.mxu0 %v2555_v43 }
 0xadb   : > { %2563 = vmatprep.subr.bf16.mxu0 %v2695_v45 }
 0xadd   : > { %2470 = vmatmul.mubr.msk.f32.vlgmr.msra.gmra.mrb[0].mxu0 %vm976_vm2, %v1854_v50 }
 0xade   : > { %2491 = vmatprep.mubr.msk.f32.mxu0 %vm2696_vm5, %v2697_v46  ;;  %2565 = vmatpush3.bf16.msra.mxu0 %v2564_v58 }
 0xadf   : > { %2566 = vmatprep.subr.bf16.mxu0 %v2695_v45 }
 0xae2   : > { %2568 = vmatpush3.bf16.msra.mxu0 %v2567_v60 }
 0xbb0   : > { %v1924_v53 = vpop.f32.mrb[0].mxu0 }
 0xbb1   : > { %v2471_v54 = vpop.f32.mrb[1].mxu0  ;;  %2481 = vmatmul.mubr.msk.f32.vlgmr.msra.gmra.mrb[0].mxu1 %vm884_vm1, %v1924_v53 }
 0xc84   : > { %v2008_v62 = vpop.f32.mrb[0].mxu1 }
 0xc85   : > { %v2009_v63 = vadd.f32 %v2311_v61, %v2008_v62  ;;  %v2482_v0 = vpop.f32.mrb[1].mxu1 }
 0xc87   : > { %2646 = vtanh.f32 %v2009_v63 }
 0xc91   : > { %v2647_v1 = vpop.eup %2646 }
 0xc92   : > { %2492 = vmatmul.mubr.msk.f32.vlgmr.msra.gmra.mrb[2].mxu0 %vm884_vm1, %v2647_v1 }
 0xd65   : > { %v2093_v3 = vpop.f32.mrb[2].mxu0 }
 0xd66   : > { %v2094_v4 = vadd.f32 %v2313_v2, %v2093_v3  ;;  %v2493_v5 = vpop.f32.mrb[3].mxu0 }
 0xd68   : > { %v2098_v6 = vsel %vm2097_vm6, %v2094_v4, -inf }
 0xd69   : > { %2099 = vmax.xlane.f32.xlu0 %v2098_v6 }
 0xdf6   : > { %v2100_v7 = vpop.xlane.xlu0 %2099 }
 0xdf7   : > { %v2101_v8 = vsub.f32 %v2094_v4, %v2100_v7 }
 0xdf9   : > { %v2102_v9 = vmul.f32 1.442695, %v2101_v8 }
 0xdfb   : > { %2648 = vpow2.f32 %v2102_v9 }
 0xe05   : > { %v2649_v10 = vpop.eup %2648 }
 0xe06   : > { %v2104_v11 = vsel %vm2097_vm6, %v2649_v10, 0.0 }
 0xe07   : > { %2105 = vadd.xlane.f32.xlu0 %v2104_v11 }
 0xe94   : > { %v2106_v37 = vpop.xlane.xlu0 %2105 }
 0xe95   : > { %2650 = vrcp.f32 %v2106_v37 }
 0xe9f   : > { %v2651_v35 = vpop.eup %2650 }
 0xea0   : > { %v2108_v12 = vmul.f32 %v2651_v35, %v2649_v10 }
 0xea2   : > { %2109 = vst.msk [vmem:[#allocation3] sm:$0x3] %vm2097_vm6, %v2108_v12 }
 0xea3 PF: > { %p2575_p6 = scmp.eq.s32.totalorder %s2815_s25, 1  ;;  %s2698_s27 = smov [#allocation3]  }
 0xea4   : > { %s2117_s21 = sshll.u32 %s2698_s27, 4  ;;  %s2118_s21 = int_to_ptr.vmem [resolvable:$true] %s2117_s21 }
 0xea5   : > { %s2652_s4 = scalar_lea.vmem %s2118_s21, 32  ;;  %p2659_p10 = scmp.lt.s32.totalorder %s2118_s21, %s2118_s21 }
 0xea6   : > { %p2653_p7 = scmp.ne.s32.totalorder %s2118_s21, %s2652_s4  ;;  %p2660_p11 = scmp.lt.s32.totalorder %s2652_s4, %s2652_s4 }
 0xea8   : > { %p2654_p8 = pnand %p2653_p7, %p2575_p6  ;;  %p2661_p12 = por %p2660_p11, %p2659_p10 }
 0xeaa   : > { %p2655_p9 = pneg %p2654_p8 }
 0xeac   : > { %p2662_p13 = pnand %p2661_p12, %p2655_p9 }
 0xeae   : > { %2665 = shalt.err (!%p2662_p13)
}
 0xeaf   : > { %s3140_s5 = sld [smem:[#allocation18_spill]] }
 0xeb5   : > { %s2666_s0 = scalar_lea.hbm %s3140_s5, 32 }
 0xeb6   : > { %p2667_p0 = scmp.ne.s32.totalorder %s3140_s5, %s2666_s0  ;;  %p2672_p3 = scmp.lt.u32.totalorder %s2666_s0, %s3140_s5 }
 0xeb8   : > { %p2668_p1 = pnand %p2667_p0, %p2575_p6 }
 0xeba   : > { %p2669_p2 = pneg %p2668_p1 }
 0xebc   : > { %p2674_p4 = pnand %p2672_p3, %p2669_p2 }
 0xebe   : > { %2677 = shalt.err (!%p2674_p4)
}
 0xebf   : > { %2572 = dma.vmem_to_hbm [thread:$0]  (%p2575_p6), %s2118_s21, 32, %s3140_s5, [#allocation4]  }
 0xec0   : > { %2683 = dma.done.wait (%p2575_p6), [#allocation4], 32  }
 0xec1   : > { %2685 = vsyncadd (%p2575_p6), [#allocation4], 4294967264 }
 0xec2 PF: > { %s3141_s29 = sld [smem:[#allocation6_spill]] }
 0xec8   : > { %s32_s2 = sadd.s32 1, %s3141_s29  }
 0xec9   : > { %p29_p5 = scmp.ge.s32.totalorder %s32_s2, 4  }
 0xecb   :  { %31 = sbr.rel (!%p29_p5) target bundleno = 14 (0xe), region = 172 }
 0xed2   :  { %2130 = vsyncpa [#allocation4], 1 }
 0xed3   :  { %2132 = vsyncpa [#allocation4 + $0x1], 1 }

</bundles_post_ra>
